<compile_context>
chip_gen: v7x
topology: tpu7x:2x2x1
jax: 0.10.0
libtpu: 0.0.40
codegen_flags: <defaults>
</compile_context>

<pallas_src>
import jax
import jax.numpy as jnp
from jax.experimental import pallas as pl
from jax.experimental.pallas import tpu as pltpu

EPS = 1e-5  # nn.BatchNorm2d default eps


# ---------------------------------------------------------------------------
# Phase 1: conv (3x3, stride 1, pad already applied) + per-image BN partials
# ---------------------------------------------------------------------------
def conv_stats_kernel(x_ref, w_ref, conv_ref, psum_ref, psq_ref):
    """One grid step = one image.

    x_ref:    (1, C1, H+2, W+2)  zero-padded image, NCHW
    w_ref:    (9, C2, C1)        3x3 weight, tap-major; w_ref[t] is (C2, C1)
    conv_ref: (1, C2, H*W)       pre-BN conv output, pixels lane-dense
    psum_ref: (1, C2, 1)         per-image per-channel sum
    psq_ref:  (1, C2, 1)         per-image per-channel sum of squares
    """
    _, C1, Hp, Wp = x_ref.shape
    H, W = Hp - 2, Wp - 2
    C2 = conv_ref.shape[1]
    HW = H * W

    # 3x3 conv as 9 shifted matmuls; channels on sublanes, pixels on lanes.
    # NOTE: at C1=4/C2=8 the MXU is mostly idle (K=4, M=8) -- the kernel is
    # DMA/VPU bound, so we keep 9 small pushes rather than building an im2col slab.
    acc = jnp.zeros((C2, HW), jnp.float32)
    for kh in range(3):
        for kw in range(3):
            # Slice the tap window directly from the Ref (no materialized full copy).
            patch = x_ref[0, :, kh:kh + H, kw:kw + W].reshape(C1, HW)
            acc = acc + jnp.dot(w_ref[kh * 3 + kw], patch,
                                preferred_element_type=jnp.float32)

    # Conv bias intentionally omitted: BatchNorm's mean subtraction cancels any
    # per-channel constant exactly, so adding it would be dead compute.

    conv_ref[0] = acc.astype(conv_ref.dtype)
    # Per-image partial BN statistics (training-mode biased stats), reduced over lanes.
    psum_ref[0] = jnp.sum(acc, axis=1, keepdims=True)
    psq_ref[0] = jnp.sum(acc * acc, axis=1, keepdims=True)


# ---------------------------------------------------------------------------
# Phase 2: per-channel affine (folded BN) + ReLU, lane-dense elementwise
# ---------------------------------------------------------------------------
def bn_relu_kernel(conv_ref, scale_ref, shift_ref, o_ref):
    """conv_ref/o_ref: (1, C2, H*W); scale_ref/shift_ref: (1, C2, 1)."""
    y = conv_ref[0] * scale_ref[0] + shift_ref[0]
    o_ref[0] = jnp.maximum(y, 0.0).astype(o_ref.dtype)


# ---------------------------------------------------------------------------
# Wrapper: PyTorch-style NCHW in / NCHW out
# ---------------------------------------------------------------------------
@jax.jit
def create_conv_1_forward(x_nchw, w_oihw, bias, gamma, beta):
    del bias  # cancelled exactly by the BN mean subtraction (see kernel comment)

    N, C1, H, W = x_nchw.shape
    C2 = w_oihw.shape[0]
    HW = H * W

    # Tap-major weight (9, C2, C1): w_folded[kh*3+kw] == w_oihw[:, :, kh, kw].  Tiny glue.
    w_folded = jnp.transpose(w_oihw, (2, 3, 0, 1)).reshape(9, C2, C1)

    # 1-pixel zero halo for the 3x3 conv.
    # TODO(synk): for large images, handle the halo in-kernel (manual halo DMA or
    # overlapping index_map) and tile over H rows instead of whole images, to avoid
    # this padded HBM copy and keep per-tile VMEM bounded on v7x (64 MiB).
    xp = jnp.pad(x_nchw, ((0, 0), (0, 0), (1, 1), (1, 1)))

    compiler_params = pltpu.CompilerParams(
        dimension_semantics=("parallel",),      # batch axis -> both TCs on v7x
        vmem_limit_bytes=32 * 1024 * 1024,      # explicit cap; safe on v5e/v6e/v7x
    )

    # ---- Phase 1: conv + per-image BN partials -----------------------------
    conv, psum, psq = pl.pallas_call(
        conv_stats_kernel,
        grid_spec=pltpu.PrefetchScalarGridSpec(
            num_scalar_prefetch=0,
            grid=(N,),
            in_specs=[
                pl.BlockSpec((1, C1, H + 2, W + 2), lambda n: (n, 0, 0, 0)),
                pl.BlockSpec((9, C2, C1), lambda n: (0, 0, 0)),   # weight resident
            ],
            out_specs=[
                pl.BlockSpec((1, C2, HW), lambda n: (n, 0, 0)),
                pl.BlockSpec((1, C2, 1), lambda n: (n, 0, 0)),
                pl.BlockSpec((1, C2, 1), lambda n: (n, 0, 0)),
            ],
        ),
        out_shape=(
            jax.ShapeDtypeStruct((N, C2, HW), jnp.float32),
            jax.ShapeDtypeStruct((N, C2, 1), jnp.float32),
            jax.ShapeDtypeStruct((N, C2, 1), jnp.float32),
        ),
        compiler_params=compiler_params,
    )(xp, w_folded)

    # ---- Glue: global batch stats -> folded per-channel scale/shift (C2-sized) ----
    count = jnp.float32(N * HW)
    mean = jnp.sum(psum, axis=0, keepdims=True) / count            # (1, C2, 1)
    ex2 = jnp.sum(psq, axis=0, keepdims=True) / count              # (1, C2, 1)
    var = jnp.maximum(ex2 - mean * mean, 0.0)                      # guard cancellation
    scale = gamma.reshape(1, C2, 1) * jax.lax.rsqrt(var + EPS)
    shift = beta.reshape(1, C2, 1) - mean * scale
    # TODO(synk): BatchNorm2d running_mean/running_var buffer updates (training-state
    # side effect) are not produced; only the forward output is computed.

    # ---- Phase 2: normalize + ReLU -----------------------------------------
    out_flat = pl.pallas_call(
        bn_relu_kernel,
        grid_spec=pltpu.PrefetchScalarGridSpec(
            num_scalar_prefetch=0,
            grid=(N,),
            in_specs=[
                pl.BlockSpec((1, C2, HW), lambda n: (n, 0, 0)),
                pl.BlockSpec((1, C2, 1), lambda n: (0, 0, 0)),
                pl.BlockSpec((1, C2, 1), lambda n: (0, 0, 0)),
            ],
            out_specs=pl.BlockSpec((1, C2, HW), lambda n: (n, 0, 0)),
        ),
        out_shape=jax.ShapeDtypeStruct((N, C2, HW), jnp.float32),
        compiler_params=compiler_params,
    )(conv, scale, shift)

    # (N, C2, H*W) -> (N, C2, H, W): trivial minor-dim split, no data movement.
    return out_flat.reshape(N, C2, H, W)


# ---------------------------------------------------------------------------
# Pure-JAX reference (matches PyTorch Conv2d + BatchNorm2d(train) + ReLU)
# ---------------------------------------------------------------------------
def _reference_forward(x_nchw, w_oihw, bias, gamma, beta):
    out = jax.lax.conv_general_dilated(
        x_nchw, w_oihw, window_strides=(1, 1), padding=((1, 1), (1, 1)),
        dimension_numbers=("NCHW", "OIHW", "NCHW"))
    out = out + bias[None, :, None, None]
    mean = jnp.mean(out, axis=(0, 2, 3), keepdims=True)
    var = jnp.mean((out - mean) ** 2, axis=(0, 2, 3), keepdims=True)
    y = (out - mean) * jax.lax.rsqrt(var + EPS)
    y = y * gamma[None, :, None, None] + beta[None, :, None, None]
    return jnp.maximum(y, 0.0)


if __name__ == "__main__":
    # Small shapes consistent with the module: batch=2, c1=4, c2=8, 16x16 spatial.
    N, C1, C2, H, W = 2, 4, 8, 16, 16

    key = jax.random.PRNGKey(0)
    kx, kw, kb = jax.random.split(key, 3)

    x = jax.random.normal(kx, (N, C1, H, W), jnp.float32)

    # PyTorch-default-style init: Conv2d kaiming-uniform -> U(-1/sqrt(fan_in), ...);
    # BatchNorm2d: gamma=1, beta=0.
    fan_in = C1 * 3 * 3
    bound = 1.0 / jnp.sqrt(fan_in)
    w_oihw = jax.random.uniform(kw, (C2, C1, 3, 3), jnp.float32, -bound, bound)
    bias = jax.random.uniform(kb, (C2,), jnp.float32, -bound, bound)
    gamma = jnp.ones((C2,), jnp.float32)
    beta = jnp.zeros((C2,), jnp.float32)

    out = create_conv_1_forward(x, w_oihw, bias, gamma, beta)
    out = jax.block_until_ready(out)

    ref = _reference_forward(x, w_oihw, bias, gamma, beta)
    assert out.shape == (N, C2, H, W)
    assert jnp.allclose(out, ref, atol=1e-4, rtol=1e-4), "mismatch vs reference"

    print("KERNEL_OK")
</pallas_src>

<mosaic_0001>
module attributes {stable_mosaic.version = 11 : i64} {
  func.func @conv_stats_kernel(%arg0: i32, %arg1: memref<1x4x18x18xf32, #tpu.memory_space<vmem>>, %arg2: memref<9x8x4xf32, #tpu.memory_space<vmem>>, %arg3: memref<1x8x256xf32, #tpu.memory_space<vmem>>, %arg4: memref<1x8x1xf32, #tpu.memory_space<vmem>>, %arg5: memref<1x8x1xf32, #tpu.memory_space<vmem>>) attributes {dimension_semantics = [#tpu.dimension_semantics<parallel>], iteration_bounds = array<i64: 2>, scalar_prefetch = 0 : i64, scratch_operands = 0 : i64, tpu.core_type = #tpu.core_type<tc>, window_params = [{transform_indices = @transform_0, window_bounds = array<i64: 1, 4, 18, 18>}, {pipeline_mode = #tpu.pipeline_mode<synchronous>, transform_indices = @transform_1, window_bounds = array<i64: 9, 8, 4>}, {transform_indices = @transform_2, window_bounds = array<i64: 1, 8, 256>}, {transform_indices = @transform_3, window_bounds = array<i64: 1, 8, 1>}, {transform_indices = @transform_4, window_bounds = array<i64: 1, 8, 1>}]} {
    %cst = arith.constant 0.000000e+00 : f32
    %0 = vector.broadcast %cst : f32 to vector<8x256xf32>
    %c0 = arith.constant 0 : index
    %c0_0 = arith.constant 0 : index
    %c0_1 = arith.constant 0 : index
    %c0_2 = arith.constant 0 : index
    %1 = vector.load %arg1[%c0, %c0_0, %c0_1, %c0_2] : memref<1x4x18x18xf32, #tpu.memory_space<vmem>>, vector<1x4x16x16xf32>
    %2 = vector.shape_cast %1 : vector<1x4x16x16xf32> to vector<4x16x16xf32>
    %3 = vector.shape_cast %2 : vector<4x16x16xf32> to vector<4x256xf32>
    %c0_3 = arith.constant 0 : index
    %c0_4 = arith.constant 0 : index
    %c0_5 = arith.constant 0 : index
    %4 = vector.load %arg2[%c0_3, %c0_4, %c0_5] : memref<9x8x4xf32, #tpu.memory_space<vmem>>, vector<1x8x4xf32>
    %5 = vector.shape_cast %4 : vector<1x8x4xf32> to vector<8x4xf32>
    %cst_6 = arith.constant dense<0.000000e+00> : vector<8x256xf32>
    %6 = tpu.matmul %5, %3, %cst_6 {dimension_numbers = #tpu.dot_dimension_numbers<[1], [0], [0], [1], [0, 0, 1, 1], [], []>} : vector<8x4xf32>, vector<4x256xf32>, vector<8x256xf32> -> vector<8x256xf32>
    %7 = arith.addf %0, %6 : vector<8x256xf32>
    %c0_7 = arith.constant 0 : index
    %c0_8 = arith.constant 0 : index
    %c0_9 = arith.constant 0 : index
    %c1 = arith.constant 1 : index
    %8 = vector.load %arg1[%c0_7, %c0_8, %c0_9, %c1] : memref<1x4x18x18xf32, #tpu.memory_space<vmem>>, vector<1x4x16x16xf32>
    %9 = vector.shape_cast %8 : vector<1x4x16x16xf32> to vector<4x16x16xf32>
    %10 = vector.shape_cast %9 : vector<4x16x16xf32> to vector<4x256xf32>
    %c1_10 = arith.constant 1 : index
    %c0_11 = arith.constant 0 : index
    %c0_12 = arith.constant 0 : index
    %11 = vector.load %arg2[%c1_10, %c0_11, %c0_12] : memref<9x8x4xf32, #tpu.memory_space<vmem>>, vector<1x8x4xf32>
    %12 = vector.shape_cast %11 : vector<1x8x4xf32> to vector<8x4xf32>
    %cst_13 = arith.constant dense<0.000000e+00> : vector<8x256xf32>
    %13 = tpu.matmul %12, %10, %cst_13 {dimension_numbers = #tpu.dot_dimension_numbers<[1], [0], [0], [1], [0, 0, 1, 1], [], []>} : vector<8x4xf32>, vector<4x256xf32>, vector<8x256xf32> -> vector<8x256xf32>
    %14 = arith.addf %7, %13 : vector<8x256xf32>
    %c0_14 = arith.constant 0 : index
    %c0_15 = arith.constant 0 : index
    %c0_16 = arith.constant 0 : index
    %c2 = arith.constant 2 : index
    %15 = vector.load %arg1[%c0_14, %c0_15, %c0_16, %c2] : memref<1x4x18x18xf32, #tpu.memory_space<vmem>>, vector<1x4x16x16xf32>
    %16 = vector.shape_cast %15 : vector<1x4x16x16xf32> to vector<4x16x16xf32>
    %17 = vector.shape_cast %16 : vector<4x16x16xf32> to vector<4x256xf32>
    %c2_17 = arith.constant 2 : index
    %c0_18 = arith.constant 0 : index
    %c0_19 = arith.constant 0 : index
    %18 = vector.load %arg2[%c2_17, %c0_18, %c0_19] : memref<9x8x4xf32, #tpu.memory_space<vmem>>, vector<1x8x4xf32>
    %19 = vector.shape_cast %18 : vector<1x8x4xf32> to vector<8x4xf32>
    %cst_20 = arith.constant dense<0.000000e+00> : vector<8x256xf32>
    %20 = tpu.matmul %19, %17, %cst_20 {dimension_numbers = #tpu.dot_dimension_numbers<[1], [0], [0], [1], [0, 0, 1, 1], [], []>} : vector<8x4xf32>, vector<4x256xf32>, vector<8x256xf32> -> vector<8x256xf32>
    %21 = arith.addf %14, %20 : vector<8x256xf32>
    %c0_21 = arith.constant 0 : index
    %c0_22 = arith.constant 0 : index
    %c1_23 = arith.constant 1 : index
    %c0_24 = arith.constant 0 : index
    %22 = vector.load %arg1[%c0_21, %c0_22, %c1_23, %c0_24] : memref<1x4x18x18xf32, #tpu.memory_space<vmem>>, vector<1x4x16x16xf32>
    %23 = vector.shape_cast %22 : vector<1x4x16x16xf32> to vector<4x16x16xf32>
    %24 = vector.shape_cast %23 : vector<4x16x16xf32> to vector<4x256xf32>
    %c3 = arith.constant 3 : index
    %c0_25 = arith.constant 0 : index
    %c0_26 = arith.constant 0 : index
    %25 = vector.load %arg2[%c3, %c0_25, %c0_26] : memref<9x8x4xf32, #tpu.memory_space<vmem>>, vector<1x8x4xf32>
    %26 = vector.shape_cast %25 : vector<1x8x4xf32> to vector<8x4xf32>
    %cst_27 = arith.constant dense<0.000000e+00> : vector<8x256xf32>
    %27 = tpu.matmul %26, %24, %cst_27 {dimension_numbers = #tpu.dot_dimension_numbers<[1], [0], [0], [1], [0, 0, 1, 1], [], []>} : vector<8x4xf32>, vector<4x256xf32>, vector<8x256xf32> -> vector<8x256xf32>
    %28 = arith.addf %21, %27 : vector<8x256xf32>
    %c0_28 = arith.constant 0 : index
    %c0_29 = arith.constant 0 : index
    %c1_30 = arith.constant 1 : index
    %c1_31 = arith.constant 1 : index
    %29 = vector.load %arg1[%c0_28, %c0_29, %c1_30, %c1_31] : memref<1x4x18x18xf32, #tpu.memory_space<vmem>>, vector<1x4x16x16xf32>
    %30 = vector.shape_cast %29 : vector<1x4x16x16xf32> to vector<4x16x16xf32>
    %31 = vector.shape_cast %30 : vector<4x16x16xf32> to vector<4x256xf32>
    %c4 = arith.constant 4 : index
    %c0_32 = arith.constant 0 : index
    %c0_33 = arith.constant 0 : index
    %32 = vector.load %arg2[%c4, %c0_32, %c0_33] : memref<9x8x4xf32, #tpu.memory_space<vmem>>, vector<1x8x4xf32>
    %33 = vector.shape_cast %32 : vector<1x8x4xf32> to vector<8x4xf32>
    %cst_34 = arith.constant dense<0.000000e+00> : vector<8x256xf32>
    %34 = tpu.matmul %33, %31, %cst_34 {dimension_numbers = #tpu.dot_dimension_numbers<[1], [0], [0], [1], [0, 0, 1, 1], [], []>} : vector<8x4xf32>, vector<4x256xf32>, vector<8x256xf32> -> vector<8x256xf32>
    %35 = arith.addf %28, %34 : vector<8x256xf32>
    %c0_35 = arith.constant 0 : index
    %c0_36 = arith.constant 0 : index
    %c1_37 = arith.constant 1 : index
    %c2_38 = arith.constant 2 : index
    %36 = vector.load %arg1[%c0_35, %c0_36, %c1_37, %c2_38] : memref<1x4x18x18xf32, #tpu.memory_space<vmem>>, vector<1x4x16x16xf32>
    %37 = vector.shape_cast %36 : vector<1x4x16x16xf32> to vector<4x16x16xf32>
    %38 = vector.shape_cast %37 : vector<4x16x16xf32> to vector<4x256xf32>
    %c5 = arith.constant 5 : index
    %c0_39 = arith.constant 0 : index
    %c0_40 = arith.constant 0 : index
    %39 = vector.load %arg2[%c5, %c0_39, %c0_40] : memref<9x8x4xf32, #tpu.memory_space<vmem>>, vector<1x8x4xf32>
    %40 = vector.shape_cast %39 : vector<1x8x4xf32> to vector<8x4xf32>
    %cst_41 = arith.constant dense<0.000000e+00> : vector<8x256xf32>
    %41 = tpu.matmul %40, %38, %cst_41 {dimension_numbers = #tpu.dot_dimension_numbers<[1], [0], [0], [1], [0, 0, 1, 1], [], []>} : vector<8x4xf32>, vector<4x256xf32>, vector<8x256xf32> -> vector<8x256xf32>
    %42 = arith.addf %35, %41 : vector<8x256xf32>
    %c0_42 = arith.constant 0 : index
    %c0_43 = arith.constant 0 : index
    %c2_44 = arith.constant 2 : index
    %c0_45 = arith.constant 0 : index
    %43 = vector.load %arg1[%c0_42, %c0_43, %c2_44, %c0_45] : memref<1x4x18x18xf32, #tpu.memory_space<vmem>>, vector<1x4x16x16xf32>
    %44 = vector.shape_cast %43 : vector<1x4x16x16xf32> to vector<4x16x16xf32>
    %45 = vector.shape_cast %44 : vector<4x16x16xf32> to vector<4x256xf32>
    %c6 = arith.constant 6 : index
    %c0_46 = arith.constant 0 : index
    %c0_47 = arith.constant 0 : index
    %46 = vector.load %arg2[%c6, %c0_46, %c0_47] : memref<9x8x4xf32, #tpu.memory_space<vmem>>, vector<1x8x4xf32>
    %47 = vector.shape_cast %46 : vector<1x8x4xf32> to vector<8x4xf32>
    %cst_48 = arith.constant dense<0.000000e+00> : vector<8x256xf32>
    %48 = tpu.matmul %47, %45, %cst_48 {dimension_numbers = #tpu.dot_dimension_numbers<[1], [0], [0], [1], [0, 0, 1, 1], [], []>} : vector<8x4xf32>, vector<4x256xf32>, vector<8x256xf32> -> vector<8x256xf32>
    %49 = arith.addf %42, %48 : vector<8x256xf32>
    %c0_49 = arith.constant 0 : index
    %c0_50 = arith.constant 0 : index
    %c2_51 = arith.constant 2 : index
    %c1_52 = arith.constant 1 : index
    %50 = vector.load %arg1[%c0_49, %c0_50, %c2_51, %c1_52] : memref<1x4x18x18xf32, #tpu.memory_space<vmem>>, vector<1x4x16x16xf32>
    %51 = vector.shape_cast %50 : vector<1x4x16x16xf32> to vector<4x16x16xf32>
    %52 = vector.shape_cast %51 : vector<4x16x16xf32> to vector<4x256xf32>
    %c7 = arith.constant 7 : index
    %c0_53 = arith.constant 0 : index
    %c0_54 = arith.constant 0 : index
    %53 = vector.load %arg2[%c7, %c0_53, %c0_54] : memref<9x8x4xf32, #tpu.memory_space<vmem>>, vector<1x8x4xf32>
    %54 = vector.shape_cast %53 : vector<1x8x4xf32> to vector<8x4xf32>
    %cst_55 = arith.constant dense<0.000000e+00> : vector<8x256xf32>
    %55 = tpu.matmul %54, %52, %cst_55 {dimension_numbers = #tpu.dot_dimension_numbers<[1], [0], [0], [1], [0, 0, 1, 1], [], []>} : vector<8x4xf32>, vector<4x256xf32>, vector<8x256xf32> -> vector<8x256xf32>
    %56 = arith.addf %49, %55 : vector<8x256xf32>
    %c0_56 = arith.constant 0 : index
    %c0_57 = arith.constant 0 : index
    %c2_58 = arith.constant 2 : index
    %c2_59 = arith.constant 2 : index
    %57 = vector.load %arg1[%c0_56, %c0_57, %c2_58, %c2_59] : memref<1x4x18x18xf32, #tpu.memory_space<vmem>>, vector<1x4x16x16xf32>
    %58 = vector.shape_cast %57 : vector<1x4x16x16xf32> to vector<4x16x16xf32>
    %59 = vector.shape_cast %58 : vector<4x16x16xf32> to vector<4x256xf32>
    %c8 = arith.constant 8 : index
    %c0_60 = arith.constant 0 : index
    %c0_61 = arith.constant 0 : index
    %60 = vector.load %arg2[%c8, %c0_60, %c0_61] : memref<9x8x4xf32, #tpu.memory_space<vmem>>, vector<1x8x4xf32>
    %61 = vector.shape_cast %60 : vector<1x8x4xf32> to vector<8x4xf32>
    %cst_62 = arith.constant dense<0.000000e+00> : vector<8x256xf32>
    %62 = tpu.matmul %61, %59, %cst_62 {dimension_numbers = #tpu.dot_dimension_numbers<[1], [0], [0], [1], [0, 0, 1, 1], [], []>} : vector<8x4xf32>, vector<4x256xf32>, vector<8x256xf32> -> vector<8x256xf32>
    %63 = arith.addf %56, %62 : vector<8x256xf32>
    %c0_63 = arith.constant 0 : index
    %c0_64 = arith.constant 0 : index
    %c0_65 = arith.constant 0 : index
    %64 = vector.load %arg3[%c0_63, %c0_64, %c0_65] : memref<1x8x256xf32, #tpu.memory_space<vmem>>, vector<1x8x256xf32>
    %65 = vector.shape_cast %64 : vector<1x8x256xf32> to vector<8x256xf32>
    %66 = vector.shape_cast %63 : vector<8x256xf32> to vector<1x8x256xf32>
    tpu.vector_store %arg3[%c0_63, %c0_64, %c0_65], %66 {strides = array<i32>} : memref<1x8x256xf32, #tpu.memory_space<vmem>>, vector<1x8x256xf32>,
    %cst_66 = arith.constant dense<0.000000e+00> : vector<8xf32>
    %67 = vector.multi_reduction <add>, %63, %cst_66 [1] : vector<8x256xf32> to vector<8xf32>
    %68 = vector.shape_cast %67 : vector<8xf32> to vector<8x1xf32>
    %c0_67 = arith.constant 0 : index
    %c0_68 = arith.constant 0 : index
    %c0_69 = arith.constant 0 : index
    %69 = vector.load %arg4[%c0_67, %c0_68, %c0_69] : memref<1x8x1xf32, #tpu.memory_space<vmem>>, vector<1x8x1xf32>
    %70 = vector.shape_cast %69 : vector<1x8x1xf32> to vector<8x1xf32>
    %71 = vector.shape_cast %68 : vector<8x1xf32> to vector<1x8x1xf32>
    tpu.vector_store %arg4[%c0_67, %c0_68, %c0_69], %71 {strides = array<i32>} : memref<1x8x1xf32, #tpu.memory_space<vmem>>, vector<1x8x1xf32>,
    %72 = arith.mulf %63, %63 : vector<8x256xf32>
    %cst_70 = arith.constant dense<0.000000e+00> : vector<8xf32>
    %73 = vector.multi_reduction <add>, %72, %cst_70 [1] : vector<8x256xf32> to vector<8xf32>
    %74 = vector.shape_cast %73 : vector<8xf32> to vector<8x1xf32>
    %c0_71 = arith.constant 0 : index
    %c0_72 = arith.constant 0 : index
    %c0_73 = arith.constant 0 : index
    %75 = vector.load %arg5[%c0_71, %c0_72, %c0_73] : memref<1x8x1xf32, #tpu.memory_space<vmem>>, vector<1x8x1xf32>
    %76 = vector.shape_cast %75 : vector<1x8x1xf32> to vector<8x1xf32>
    %77 = vector.shape_cast %74 : vector<8x1xf32> to vector<1x8x1xf32>
    tpu.vector_store %arg5[%c0_71, %c0_72, %c0_73], %77 {strides = array<i32>} : memref<1x8x1xf32, #tpu.memory_space<vmem>>, vector<1x8x1xf32>,
    return
  }
  func.func @transform_0(%arg0: i32) -> (i32, i32, i32, i32) {
    %c0_i32 = arith.constant 0 : i32
    %c0_i32_0 = arith.constant 0 : i32
    %c0_i32_1 = arith.constant 0 : i32
    %c0_i32_2 = arith.constant 0 : i32
    return %arg0, %c0_i32, %c0_i32_0, %c0_i32_1 : i32, i32, i32, i32
  }
  func.func @transform_1(%arg0: i32) -> (i32, i32, i32) {
    %c0_i32 = arith.constant 0 : i32
    %c0_i32_0 = arith.constant 0 : i32
    %c0_i32_1 = arith.constant 0 : i32
    %c0_i32_2 = arith.constant 0 : i32
    return %c0_i32, %c0_i32_0, %c0_i32_1 : i32, i32, i32
  }
  func.func @transform_2(%arg0: i32) -> (i32, i32, i32) {
    %c0_i32 = arith.constant 0 : i32
    %c0_i32_0 = arith.constant 0 : i32
    %c0_i32_1 = arith.constant 0 : i32
    return %arg0, %c0_i32, %c0_i32_0 : i32, i32, i32
  }
  func.func @transform_3(%arg0: i32) -> (i32, i32, i32) {
    %c0_i32 = arith.constant 0 : i32
    %c0_i32_0 = arith.constant 0 : i32
    %c0_i32_1 = arith.constant 0 : i32
    return %arg0, %c0_i32, %c0_i32_0 : i32, i32, i32
  }
  func.func @transform_4(%arg0: i32) -> (i32, i32, i32) {
    %c0_i32 = arith.constant 0 : i32
    %c0_i32_0 = arith.constant 0 : i32
    %c0_i32_1 = arith.constant 0 : i32
    return %arg0, %c0_i32, %c0_i32_0 : i32, i32, i32
  }
}

module attributes {stable_mosaic.version = 11 : i64} {
  func.func @bn_relu_kernel(%arg0: i32, %arg1: memref<1x8x256xf32, #tpu.memory_space<vmem>>, %arg2: memref<1x8x1xf32, #tpu.memory_space<vmem>>, %arg3: memref<1x8x1xf32, #tpu.memory_space<vmem>>, %arg4: memref<1x8x256xf32, #tpu.memory_space<vmem>>) attributes {dimension_semantics = [#tpu.dimension_semantics<parallel>], iteration_bounds = array<i64: 2>, scalar_prefetch = 0 : i64, scratch_operands = 0 : i64, tpu.core_type = #tpu.core_type<tc>, window_params = [{transform_indices = @transform_0, window_bounds = array<i64: 1, 8, 256>}, {pipeline_mode = #tpu.pipeline_mode<synchronous>, transform_indices = @transform_1, window_bounds = array<i64: 1, 8, 1>}, {pipeline_mode = #tpu.pipeline_mode<synchronous>, transform_indices = @transform_2, window_bounds = array<i64: 1, 8, 1>}, {transform_indices = @transform_3, window_bounds = array<i64: 1, 8, 256>}]} {
    %c0 = arith.constant 0 : index
    %c0_0 = arith.constant 0 : index
    %c0_1 = arith.constant 0 : index
    %0 = vector.load %arg1[%c0, %c0_0, %c0_1] : memref<1x8x256xf32, #tpu.memory_space<vmem>>, vector<1x8x256xf32>
    %1 = vector.shape_cast %0 : vector<1x8x256xf32> to vector<8x256xf32>
    %c0_2 = arith.constant 0 : index
    %c0_3 = arith.constant 0 : index
    %c0_4 = arith.constant 0 : index
    %2 = vector.load %arg2[%c0_2, %c0_3, %c0_4] : memref<1x8x1xf32, #tpu.memory_space<vmem>>, vector<1x8x1xf32>
    %3 = vector.shape_cast %2 : vector<1x8x1xf32> to vector<8x1xf32>
    %4 = vector.broadcast %3 : vector<8x1xf32> to vector<8x256xf32>
    %5 = arith.mulf %1, %4 : vector<8x256xf32>
    %c0_5 = arith.constant 0 : index
    %c0_6 = arith.constant 0 : index
    %c0_7 = arith.constant 0 : index
    %6 = vector.load %arg3[%c0_5, %c0_6, %c0_7] : memref<1x8x1xf32, #tpu.memory_space<vmem>>, vector<1x8x1xf32>
    %7 = vector.shape_cast %6 : vector<1x8x1xf32> to vector<8x1xf32>
    %8 = vector.broadcast %7 : vector<8x1xf32> to vector<8x256xf32>
    %9 = arith.addf %5, %8 : vector<8x256xf32>
    %cst = arith.constant 0.000000e+00 : f32
    %10 = vector.broadcast %cst : f32 to vector<8x256xf32>
    %11 = arith.maximumf %9, %10 : vector<8x256xf32>
    %c0_8 = arith.constant 0 : index
    %c0_9 = arith.constant 0 : index
    %c0_10 = arith.constant 0 : index
    %12 = vector.load %arg4[%c0_8, %c0_9, %c0_10] : memref<1x8x256xf32, #tpu.memory_space<vmem>>, vector<1x8x256xf32>
    %13 = vector.shape_cast %12 : vector<1x8x256xf32> to vector<8x256xf32>
    %14 = vector.shape_cast %11 : vector<8x256xf32> to vector<1x8x256xf32>
    tpu.vector_store %arg4[%c0_8, %c0_9, %c0_10], %14 {strides = array<i32>} : memref<1x8x256xf32, #tpu.memory_space<vmem>>, vector<1x8x256xf32>,
    return
  }
  func.func @transform_0(%arg0: i32) -> (i32, i32, i32) {
    %c0_i32 = arith.constant 0 : i32
    %c0_i32_0 = arith.constant 0 : i32
    %c0_i32_1 = arith.constant 0 : i32
    return %arg0, %c0_i32, %c0_i32_0 : i32, i32, i32
  }
  func.func @transform_1(%arg0: i32) -> (i32, i32, i32) {
    %c0_i32 = arith.constant 0 : i32
    %c0_i32_0 = arith.constant 0 : i32
    %c0_i32_1 = arith.constant 0 : i32
    %c0_i32_2 = arith.constant 0 : i32
    return %c0_i32, %c0_i32_0, %c0_i32_1 : i32, i32, i32
  }
  func.func @transform_2(%arg0: i32) -> (i32, i32, i32) {
    %c0_i32 = arith.constant 0 : i32
    %c0_i32_0 = arith.constant 0 : i32
    %c0_i32_1 = arith.constant 0 : i32
    %c0_i32_2 = arith.constant 0 : i32
    return %c0_i32, %c0_i32_0, %c0_i32_1 : i32, i32, i32
  }
  func.func @transform_3(%arg0: i32) -> (i32, i32, i32) {
    %c0_i32 = arith.constant 0 : i32
    %c0_i32_0 = arith.constant 0 : i32
    %c0_i32_1 = arith.constant 0 : i32
    return %arg0, %c0_i32, %c0_i32_0 : i32, i32, i32
  }
}

</mosaic_0001>

<bundles_post_ra>
// kernel: create_conv_1_forward.3
= control target key start
LH: loop header
LB: loop body
LE: loop exit
PB: predicated region body
PF: predicated region fallthrough
CT: control target
= control target key end

     0   :  { %s300_s12 = smov 0   ;;  %s323_s0 = inlined_call_operand.vmem [shape: f32[2,8,256], index: 0, kind: input, shape index: {}]   ;;  %s324_s1 = inlined_call_operand.vmem [shape: f32[1,8,1], index: 1, kind: input, shape index: {}]   ;;  %s325_s2 = inlined_call_operand.vmem [shape: f32[1,8,1], index: 2, kind: input, shape index: {}]   ;;  %s326_s3 = inlined_call_operand.vmem [shape: f32[2,8,256], index: 3, kind: output, shape index: {}]  }
   0x1 LB: > { %s248_s13 = sadd.s32 4294967295, %s277_s12   ;;  %p252_p0 = scmp.ge.s32.totalorder %s277_s12, 1  ;;  %s277_s12 = sphi %s300_s12, %s13_s12  }
   0x2   : > { %p137_p1 = scmp.lt.s32.totalorder %s277_s12, 3 }
   0x4   : > { %p138_p2 = pnand %p252_p0, %p137_p1 }
   0x5   : > { %v173_v0 = vld [vmem:[%s324_s1] sm:$0xff] (!%p138_p2)  ;;  %v279_v1 = vmov (!%p138_p2), 0   ;;  %p161_p3 = scmp.lt.s32.totalorder (!%p138_p2), %s248_s13, 1 }
   0x6   : > { %141 = sbr.rel (%p138_p2) target bundleno = 144 (0x90), region = 32  ;;  %270 = vset.pattern.permute.xlu0 (!%p138_p2), %v279_v1  ;;  %v181_v2 = vld [vmem:[%s325_s2] sm:$0xff] (!%p138_p2) }
   0x7   : > { %176 = vperm.xlu0 (!%p138_p2), %270, %v173_v0  }
   0xb   : > { %184 = vperm.xlu0 (!%p138_p2), %270, %v181_v2  }
   0xd   : > { %s328_s13 = smov (!%p161_p3, %s248_s13), 1 }
   0xe   : > { %s259_s18 = sshll.u32 %s328_s13, 4 }
   0xf   : > { %s165_s21 = scalar_lea.vmem %s323_s0, %s259_s18  ;;  %s170_s24 = scalar_lea.vmem %s326_s3, %s259_s18 }
  0x10   : > { %v171_v4 = vld [vmem:[%s165_s21] sm:$0xff]  ;;  %v172_v5 = vld [vmem:[%s165_s21 + $0x8] sm:$0xff] }
  0x86   : > { %v177_v3 = vpop.permute.xlu0 %176 }
  0x87   : > { %v179_v6 = vmul.f32 %v177_v3, %v171_v4  ;;  %v180_v7 = vmul.f32 %v177_v3, %v172_v5 }
  0x8a   : > { %v185_v8 = vpop.permute.xlu0 %184 }
  0x8b   : > { %v187_v9 = vadd.f32 %v185_v8, %v179_v6  ;;  %v188_v10 = vadd.f32 %v185_v8, %v180_v7 }
  0x8d   : > { %v189_v11 = vmax.f32 %v187_v9, 0.0  ;;  %v190_v12 = vmax.f32 %v188_v10, 0.0 }
  0x8f   : > { %191 = vst [vmem:[%s170_s24] sm:$0xff] %v189_v11  ;;  %192 = vst [vmem:[%s170_s24 + $0x8] sm:$0xff] %v190_v12 }
  0x90 PF: > { %s13_s12 = sadd.s32 1, %s277_s12  }
  0x91   : > { %p10_p4 = scmp.ge.s32.totalorder %s13_s12, 4  }
  0x93   :  { %12 = sbr.rel (!%p10_p4) target bundleno = 1 (0x1), region = 62 }

// kernel: create_conv_1_forward.2
= control target key start
LH: loop header
LB: loop body
LE: loop exit
PB: predicated region body
PF: predicated region fallthrough
CT: control target
= control target key end

     0   :  { %s3377_s15 = smov 0   ;;  %s4584_s0 = inlined_call_operand.vmem [shape: f32[2,4,18,18], index: 0, kind: input, shape index: {}]   ;;  %s4585_s1 = inlined_call_operand.vmem [shape: f32[9,8,4], index: 1, kind: input, shape index: {}]   ;;  %s4586_s2 = inlined_call_operand.vmem [shape: f32[2,8,256], index: 2, kind: output, shape index: {0}]   ;;  %s4587_s3 = inlined_call_operand.vmem [shape: f32[2,8,1], index: 3, kind: output, shape index: {1}]   ;;  %s4588_s4 = inlined_call_operand.vmem [shape: f32[2,8,1], index: 4, kind: output, shape index: {2}]  }
   0x1 LB: > { %s3219_s16 = sadd.s32 4294967295, %s3338_s15   ;;  %p3223_p0 = scmp.ge.s32.totalorder %s3338_s15, 1  ;;  %s3338_s15 = sphi %s3377_s15, %s15_s15  }
   0x2   : > { %p167_p1 = scmp.lt.s32.totalorder %s3338_s15, 3 }
   0x4   : > { %p168_p2 = pnand %p3223_p0, %p167_p1 }
   0x6   : > { %171 = sbr.rel (%p168_p2) target bundleno = 882 (0x372), region = 28 }
   0xd   : > { %p201_p3 = scmp.lt.s32.totalorder %s3219_s16, 1  ;;  %v3340_v0 = vmov 1983009808   ;;  %v232_v2 = vlaneseq  ;;  %s3341_s21 = smov 127   ;;  %v3342_v9 = vmov 0.0   ;;  %vm419_vm0 = vcmask 130048  }
   0xe   : > { %v230_v1 = vunpack.c.l.s4 %v3340_v0  ;;  %1792 = vmatprep.mubr.f32.mxu0 %v3342_v9  ;;  %756 = vmatprep.mubr.f32.mxu1 %v3342_v9  ;;  %s3343_s22 = smov 126   ;;  %s3345_s23 = smov 32   ;;  %vm421_vm1 = vcmask 261120   ;;  %vm423_vm2 = vcmask 392192   ;;  %vm425_vm3 = vcmask 523264  }
   0xf   : > { %s4603_s16 = smov (!%p201_p3, %s3219_s16), 1  ;;  %v3395_v6 = vshrl.u32 %v232_v2, 7  ;;  %s3346_s24 = smov 64   ;;  %vm427_vm4 = vcmask 654336   ;;  %vm429_vm5 = vcmask 785408   ;;  %vm431_vm6 = vcmask 916480  }
  0x10   : > { %s3283_s17 = smul.u32 96, %s4603_s16  ;;  %v231_v5 = vunpack.c.0.s8 %v230_v1  ;;  %s3347_s25 = smov 96   ;;  %vm685_vm7 = vcmask 1043456   ;;  %vm681_vm8 = vcmask 31744   ;;  %vm3094_vm9 = vcmask 7168  }
  0x11   : > { %s3348_s26 = smov 16   ;;  %s3349_s27 = smov 48  }
  0x12   : > { %s3391_s20 = scalar_lea.vmem %s4584_s0, %s3283_s17  ;;  %v3414_v14 = vsub.s32 %v231_v5, %v3395_v6  ;;  %s3350_s28 = smov 80  }
  0x13   : > { %v1476_v3 = vld [vmem:[%s3391_s20 + $0x39] sm:$0xff]  ;;  %v1472_v4 = vld [vmem:[%s3391_s20 + $0x9] sm:$0xff]  ;;  %v1478_v7 = vld [vmem:[%s3391_s20 + $0x51] sm:$0xff]  ;;  %s3351_s29 = smov 112  }
  0x14   : > { %1497 = vrot.lane.b32.xlu1 %v1476_v3, %s3341_s21  ;;  %1489 = vrot.lane.b32.xlu0 %v1472_v4, %s3341_s21  ;;  %v1474_v8 = vld [vmem:[%s3391_s20 + $0x21] sm:$0xff]  ;;  %v3407_v11 = vld [vmem:[%s3391_s20 + $0x50] sm:$0xff] }
  0x15   : > { %v3404_v10 = vld [vmem:[%s3391_s20 + $0x20] sm:$0xff]  ;;  %v3411_v13 = vld [vmem:[%s3391_s20 + $0x8] sm:$0xff]  ;;  %v3421_v17 = vld [vmem:[%s3391_s20 + $0x38] sm:$0xff] }
  0x16   : > { %v1473_v12 = vld [vmem:[%s3391_s20 + $0x19] sm:$0xff]  ;;  %v311_v15 = vcombine.low %v3404_v10, %v3407_v11  ;;  %v312_v16 = vcombine.high %v3404_v10, %v3407_v11  ;;  %v295_v18 = vcombine.low %v3411_v13, %v3421_v17  ;;  %v296_v19 = vcombine.high %v3411_v13, %v3421_v17  ;;  %v3433_v21 = vld [vmem:[%s3391_s20 + $0x48] sm:$0xff]  ;;  %v3447_v27 = vld [vmem:[%s3391_s20 + $0x30] sm:$0xff] }
  0x17   : > { %v3430_v20 = vld [vmem:[%s3391_s20 + $0x18] sm:$0xff]  ;;  %v1471_v22 = vld [vmem:[%s3391_s20 + $0x1] sm:$0xff]  ;;  %v1477_v31 = vld [vmem:[%s3391_s20 + $0x49] sm:$0xff] }
  0x18   : > { %1501 = vrot.lane.b32.xlu1 %v1478_v7, %s3341_s21  ;;  %1493 = vrot.lane.b32.xlu0 %v1474_v8, %s3341_s21  ;;  %v3437_v23 = vrot.slane %v312_v16, %v3414_v14  ;;  %v3440_v24 = vld [vmem:[%s3391_s20] sm:$0xff]  ;;  %v243_v25 = vcombine.low %v3430_v20, %v3433_v21  ;;  %v244_v26 = vcombine.high %v3430_v20, %v3433_v21  ;;  %v1475_v32 = vld [vmem:[%s3391_s20 + $0x31] sm:$0xff] }
  0x19   : > { %v3450_v28 = vrot.slane %v296_v19, %v3414_v14  ;;  %v227_v29 = vcombine.low %v3440_v24, %v3447_v27  ;;  %v228_v30 = vcombine.high %v3440_v24, %v3447_v27  ;;  %v2430_v39 = vld [vmem:[%s3391_s20 + $0xa] sm:$0xff]  ;;  %v2432_v40 = vld [vmem:[%s3391_s20 + $0x22] sm:$0xff]  ;;  %v2434_v41 = vld [vmem:[%s3391_s20 + $0x3a] sm:$0xff]  ;;  %v3536_v47 = vrot.slane %v311_v15, %v3414_v14 }
  0x1a   : > { %v3459_v33 = vrot.slane %v244_v26, %v3414_v14  ;;  %v2436_v42 = vld [vmem:[%s3391_s20 + $0x52] sm:$0xff]  ;;  %v2429_v43 = vld [vmem:[%s3391_s20 + $0x2] sm:$0xff]  ;;  %v2431_v44 = vld [vmem:[%s3391_s20 + $0x1a] sm:$0xff]  ;;  %v3542_v48 = vrot.slane %v295_v18, %v3414_v14  ;;  %v2207_v49 = vcombine.low %v2430_v39, %v2434_v41  ;;  %v3550_v51 = vrot.slane %v243_v25, %v3414_v14 }
  0x1b   : > { %v3468_v36 = vrot.slane %v228_v30, %v3414_v14  ;;  %v2433_v45 = vld [vmem:[%s3391_s20 + $0x32] sm:$0xff]  ;;  %v2435_v46 = vld [vmem:[%s3391_s20 + $0x4a] sm:$0xff]  ;;  %v2223_v50 = vcombine.low %v2432_v40, %v2436_v42  ;;  %v3553_v52 = vrot.slane %v227_v29, %v3414_v14 }
  0x1c   : > { %1491 = vrot.lane.b32.xlu1 %v1473_v12, %s3341_s21  ;;  %1487 = vrot.lane.b32.xlu0 %v1471_v22, %s3341_s21  ;;  %v327_v53 = vcombine.low %v3542_v48, %v3536_v47  ;;  %v3560_v54 = vrot.slane %v2207_v49, %v3414_v14  ;;  %v2139_v58 = vcombine.low %v2429_v43, %v2433_v45 }
  0x1d   : > { %v3563_v55 = vrot.slane %v2223_v50, %v3414_v14  ;;  %v259_v57 = vcombine.low %v3553_v52, %v3550_v51  ;;  %v2155_v59 = vcombine.low %v2431_v44, %v2435_v46  ;;  %v328_v62 = vcombine.high %v3542_v48, %v3536_v47 }
  0x1e   : > { %v3572_v60 = vrot.slane %v2139_v58, %v3414_v14  ;;  %v2140_v15 = vcombine.high %v2429_v43, %v2433_v45  ;;  %v2156_v16 = vcombine.high %v2431_v44, %v2435_v46  ;;  %v4591_v47 = vcombine.high %v3553_v52, %v3550_v51 }
  0x1f   : > { %v2239_v56 = vcombine.low %v3560_v54, %v3563_v55  ;;  %v3575_v61 = vrot.slane %v2155_v59, %v3414_v14  ;;  %v2240_v0 = vcombine.high %v3560_v54, %v3563_v55 }
  0x20   : > { %1499 = vrot.lane.b32.xlu1 %v1477_v31, %s3341_s21  ;;  %1495 = vrot.lane.b32.xlu0 %v1475_v32, %s3341_s21  ;;  %v3601_v18 = vrot.slane %v2156_v16, %v3414_v14 }
  0x21   : > { %v2171_v63 = vcombine.low %v3572_v60, %v3575_v61  ;;  %v4592_v54 = vcombine.high %v3572_v60, %v3575_v61 }
  0x24   : > { %455 = vrot.lane.b32.xlu1 %v3404_v10, %s3341_s21  ;;  %451 = vrot.lane.b32.xlu0 %v3411_v13, %s3341_s21 }
  0x28   : > { %463 = vrot.lane.b32.xlu1 %v3407_v11, %s3341_s21  ;;  %459 = vrot.lane.b32.xlu0 %v3421_v17, %s3341_s21 }
  0x2c   : > { %1823 = vrot.lane.b32.xlu1 %v1474_v8, %s3343_s22  ;;  %1819 = vrot.lane.b32.xlu0 %v1472_v4, %s3343_s22  ;;  %v2224_v4 = vcombine.high %v2432_v40, %v2436_v42 }
  0x30   : > { %1831 = vrot.lane.b32.xlu1 %v1478_v7, %s3343_s22  ;;  %1827 = vrot.lane.b32.xlu0 %v1476_v3, %s3343_s22  ;;  %v2208_v3 = vcombine.high %v2430_v39, %v2434_v41  ;;  %v3593_v7 = vrot.slane %v2224_v4, %v3414_v14 }
  0x32   : > { %v3590_v5 = vrot.slane %v2208_v3, %v3414_v14 }
  0x34   : > { %453 = vrot.lane.b32.xlu1 %v3430_v20, %s3341_s21  ;;  %449 = vrot.lane.b32.xlu0 %v3440_v24, %s3341_s21 }
  0x38   : > { %461 = vrot.lane.b32.xlu1 %v3433_v21, %s3341_s21  ;;  %457 = vrot.lane.b32.xlu0 %v3447_v27, %s3341_s21 }
  0x3c   : > { %1821 = vrot.lane.b32.xlu1 %v1473_v12, %s3343_s22  ;;  %1817 = vrot.lane.b32.xlu0 %v1471_v22, %s3343_s22 }
  0x40   : > { %1829 = vrot.lane.b32.xlu1 %v1477_v31, %s3343_s22  ;;  %1825 = vrot.lane.b32.xlu0 %v1475_v32, %s3343_s22 }
  0x44   : > { %861 = vrot.lane.b32.xlu0 %v3411_v13, %s3343_s22  ;;  %865 = vrot.lane.b32.xlu1 %v3404_v10, %s3343_s22  ;;  %v3344_v10 = vmov 1934713408  }
  0x48   : > { %869 = vrot.lane.b32.xlu0 %v3421_v17, %s3343_s22  ;;  %873 = vrot.lane.b32.xlu1 %v3407_v11, %s3343_s22  ;;  %v262_v11 = vunpack.c.l.s4 %v3344_v10  ;;  %v3598_v17 = vrot.slane %v2140_v15, %v3414_v14 }
  0x4c   : > { %2447 = vrot.lane.b32.xlu0 %v2430_v39, %s3341_s21  ;;  %2451 = vrot.lane.b32.xlu1 %v2432_v40, %s3341_s21 }
  0x50   : > { %2455 = vrot.lane.b32.xlu0 %v2434_v41, %s3341_s21  ;;  %2459 = vrot.lane.b32.xlu1 %v2436_v42, %s3341_s21 }
  0x54   : > { %859 = vrot.lane.b32.xlu0 %v3440_v24, %s3343_s22  ;;  %863 = vrot.lane.b32.xlu1 %v3430_v20, %s3343_s22  ;;  %v263_v20 = vunpack.c.0.s8 %v262_v11 }
  0x56   : > { %v3609_v32 = vsub.s32 %v263_v20, %v3395_v6 }
  0x58   : > { %867 = vrot.lane.b32.xlu0 %v3447_v27, %s3343_s22  ;;  %871 = vrot.lane.b32.xlu1 %v3433_v21, %s3343_s22  ;;  %v274_v48 = vrot.slane %v4591_v47, %v3609_v32  ;;  %v2186_v55 = vrot.slane %v4592_v54, %v3609_v32 }
  0x5a   : > { %v292_v51 = vcombine.high %v274_v48, %v3342_v9  ;;  %v2204_v61 = vcombine.high %v2186_v55, %v3342_v9 }
  0x5c   : > { %2445 = vrot.lane.b32.xlu0 %v2429_v43, %s3341_s21  ;;  %2449 = vrot.lane.b32.xlu1 %v2431_v44, %s3341_s21 }
  0x60   : > { %2453 = vrot.lane.b32.xlu0 %v2433_v45, %s3341_s21  ;;  %2457 = vrot.lane.b32.xlu1 %v2435_v46, %s3341_s21 }
  0x64   : > { %2777 = vrot.lane.b32.xlu0 %v2430_v39, %s3343_s22  ;;  %2781 = vrot.lane.b32.xlu1 %v2432_v40, %s3343_s22 }
  0x68   : > { %2785 = vrot.lane.b32.xlu0 %v2434_v41, %s3343_s22  ;;  %2789 = vrot.lane.b32.xlu1 %v2436_v42, %s3343_s22 }
  0x6c   : > { %2775 = vrot.lane.b32.xlu0 %v2429_v43, %s3343_s22  ;;  %2779 = vrot.lane.b32.xlu1 %v2431_v44, %s3343_s22 }
  0x70   : > { %2783 = vrot.lane.b32.xlu0 %v2433_v45, %s3343_s22  ;;  %2787 = vrot.lane.b32.xlu1 %v2435_v46, %s3343_s22 }
  0x86   : > { %v1498_v12 = vpop.permute.xlu1 %1497  ;;  %v1490_v13 = vpop.permute.xlu0 %1489 }
  0x87   : > { %v1579_v19 = vcombine.low %v1490_v13, %v1498_v12  ;;  %v1580_v21 = vcombine.high %v1490_v13, %v1498_v12 }
  0x89   : > { %v1587_v29 = vrot.slane %v1579_v19, %v3414_v14  ;;  %v1594_v39 = vrot.slane %v1580_v21, %v3414_v14 }
  0x8a   : > { %v1502_v22 = vpop.permute.xlu1 %1501  ;;  %v1494_v24 = vpop.permute.xlu0 %1493 }
  0x8b   : > { %v1595_v26 = vcombine.low %v1494_v24, %v1502_v22  ;;  %v1596_v27 = vcombine.high %v1494_v24, %v1502_v22 }
  0x8d   : > { %v1603_v30 = vrot.slane %v1595_v26, %v3414_v14  ;;  %v1610_v31 = vrot.slane %v1596_v27, %v3414_v14 }
  0x8e   : > { %v1492_v40 = vpop.permute.xlu1 %1491  ;;  %v1488_v41 = vpop.permute.xlu0 %1487 }
  0x8f   : > { %v1612_v42 = vcombine.high %v1587_v29, %v1603_v30  ;;  %v1627_v43 = vcombine.low %v1594_v39, %v1610_v31  ;;  %v1611_v12 = vcombine.low %v1587_v29, %v1603_v30  ;;  %v1628_v16 = vcombine.high %v1594_v39, %v1610_v31 }
  0x91   : > { %v1626_v44 = vrot.slane %v1612_v42, %v3609_v32  ;;  %v1635_v6 = vrot.slane %v1627_v43, %v3609_v32  ;;  %v1642_v27 = vrot.slane %v1628_v16, %v3609_v32  ;;  %v3635_v29 = vrot.slane %v1611_v12, %v3609_v32 }
  0x92   : > { %v1500_v45 = vpop.permute.xlu1 %1499  ;;  %v1496_v46 = vpop.permute.xlu0 %1495 }
  0x93   : > { %v1527_v49 = vcombine.low %v1492_v40, %v1500_v45  ;;  %v1528_v50 = vcombine.high %v1492_v40, %v1500_v45  ;;  %v1511_v58 = vcombine.low %v1488_v41, %v1496_v46  ;;  %v1512_v59 = vcombine.high %v1488_v41, %v1496_v46  ;;  %1680 = vrot.lane.b32.xlu0 %v1626_v44, %s3345_s23 }
  0x94   : > { %v1645_v30 = vcombine.high %v1635_v6, %v3342_v9 }
  0x95   : > { %v1535_v3 = vrot.slane %v1527_v49, %v3414_v14  ;;  %v1542_v4 = vrot.slane %v1528_v50, %v3414_v14  ;;  %v1519_v10 = vrot.slane %v1511_v58, %v3414_v14  ;;  %v1526_v11 = vrot.slane %v1512_v59, %v3414_v14 }
  0x96   : > { %v3619_v13 = vpop.permute.xlu1 %455  ;;  %v3621_v15 = vpop.permute.xlu0 %451  ;;  %v1643_v49 = vcombine.high %v3635_v29, %v3342_v9 }
  0x97   : > { %1688 = vrot.lane.b32.xlu0 %v1635_v6, %s3346_s24  ;;  %v1544_v20 = vcombine.high %v1519_v10, %v1535_v3  ;;  %v1559_v22 = vcombine.low %v1526_v11, %v1542_v4  ;;  %v1560_v43 = vcombine.high %v1526_v11, %v1542_v4  ;;  %v1644_v4 = vcombine.high %v1626_v44, %v3342_v9 }
  0x99   : > { %v3627_v21 = vrot.slane %v1544_v20, %v3609_v32  ;;  %v1567_v42 = vrot.slane %v1559_v22, %v3609_v32  ;;  %v1574_v50 = vrot.slane %v1560_v43, %v3609_v32  ;;  %v1543_v20 = vcombine.low %v1519_v10, %v1535_v3 }
  0x9a   : > { %v3629_v24 = vpop.permute.xlu1 %463  ;;  %v3631_v26 = vpop.permute.xlu0 %459 }
  0x9b   : > { %v557_v31 = vcombine.low %v3619_v13, %v3629_v24  ;;  %v541_v39 = vcombine.low %v3621_v15, %v3631_v26  ;;  %1652 = vrot.lane.b32.xlu1 %v3627_v21, %s3345_s23  ;;  %1696 = vrot.lane.b32.xlu0 %v1642_v27, %s3347_s25  ;;  %v3686_v10 = vrot.slane %v1543_v20, %v3609_v32 }
  0x9c   : > { %v1578_v2 = vcombine.high %v1574_v50, %v3342_v9 }
  0x9d   : > { %v565_v40 = vrot.slane %v557_v31, %v3414_v14  ;;  %v549_v41 = vrot.slane %v541_v39, %v3414_v14 }
  0x9e   : > { %v3649_v45 = vpop.permute.xlu1 %1823  ;;  %v3651_v46 = vpop.permute.xlu0 %1819 }
  0x9f   : > { %1660 = vrot.lane.b32.xlu1 %v1567_v42, %s3346_s24  ;;  %1676 = vrot.lane.b32.xlu0 %v1643_v49, %s3348_s26  ;;  %v574_v58 = vcombine.high %v549_v41, %v565_v40  ;;  %v573_v44 = vcombine.low %v549_v41, %v565_v40 }
  0xa1   : > { %v3672_v39 = vrot.slane %v574_v58, %v3609_v32  ;;  %v1646_v58 = vcombine.high %v1642_v27, %v3342_v9  ;;  %v3694_v6 = vrot.slane %v573_v44, %v3609_v32  ;;  %v1575_v27 = vcombine.high %v3686_v10, %v3342_v9 }
  0xa2   : > { %v3658_v59 = vpop.permute.xlu1 %1831  ;;  %v3660_v12 = vpop.permute.xlu0 %1827 }
  0xa3   : > { %v1925_v11 = vcombine.low %v3649_v45, %v3658_v59  ;;  %v1909_v16 = vcombine.low %v3651_v46, %v3660_v12  ;;  %1668 = vrot.lane.b32.xlu1 %v1574_v50, %s3347_s25  ;;  %1684 = vrot.lane.b32.xlu0 %v1644_v4, %s3349_s27  ;;  %v605_v44 = vcombine.high %v3694_v6, %v3342_v9 }
  0xa5   : > { %v1933_v22 = vrot.slane %v1925_v11, %v3414_v14  ;;  %v1917_v31 = vrot.slane %v1909_v16, %v3414_v14 }
  0xa6   : > { %v3674_v43 = vpop.permute.xlu1 %453  ;;  %v3676_v49 = vpop.permute.xlu0 %449 }
  0xa7   : > { %642 = vrot.lane.b32.xlu1 %v3672_v39, %s3345_s23  ;;  %v1942_v38 = vcombine.high %v1917_v31, %v1933_v22  ;;  %1692 = vrot.lane.b32.xlu0 %v1645_v30, %s3350_s28 }
  0xa9   : > { %v3683_v3 = vrot.slane %v1942_v38, %v3609_v32 }
  0xaa   : > { %v3688_v40 = vpop.permute.xlu1 %461  ;;  %v3690_v41 = vpop.permute.xlu0 %457 }
  0xab   : > { %v489_v4 = vcombine.low %v3674_v43, %v3688_v40  ;;  %v473_v30 = vcombine.low %v3676_v49, %v3690_v41  ;;  %2010 = vrot.lane.b32.xlu1 %v3683_v3, %s3345_s23  ;;  %1700 = vrot.lane.b32.xlu0 %v1646_v58, %s3351_s29  ;;  %v1576_v58 = vcombine.high %v3627_v21, %v3342_v9 }
  0xac   : > { %v1577_v21 = vcombine.high %v1567_v42, %v3342_v9  ;;  %v542_v42 = vcombine.high %v3621_v15, %v3631_v26  ;;  %v1910_v15 = vcombine.high %v3651_v46, %v3660_v12  ;;  %v490_v26 = vcombine.high %v3674_v43, %v3688_v40 }
  0xad   : > { %v497_v38 = vrot.slane %v489_v4, %v3414_v14  ;;  %v481_v11 = vrot.slane %v473_v30, %v3414_v14 }
  0xae   : > { %v3707_v16 = vpop.permute.xlu1 %1821  ;;  %v3709_v20 = vpop.permute.xlu0 %1817  ;;  %v1924_v46 = vrot.slane %v1910_v15, %v3414_v14 }
  0xaf   : > { %v505_v19 = vcombine.low %v481_v11, %v497_v38  ;;  %1648 = vrot.lane.b32.xlu1 %v1575_v27, %s3348_s26  ;;  %638 = vrot.lane.b32.xlu0 %v605_v44, %s3348_s26  ;;  %v1941_v27 = vcombine.low %v1917_v31, %v1933_v22 }
  0xb1   : > { %v3718_v4 = vrot.slane %v505_v19, %v3609_v32 }
  0xb2   : > { %v1830_v30 = vpop.permute.xlu1 %1829  ;;  %v1826_v35 = vpop.permute.xlu0 %1825 }
  0xb3   : > { %v1857_v25 = vcombine.low %v3707_v16, %v1830_v30  ;;  %v1841_v37 = vcombine.low %v3709_v20, %v1826_v35  ;;  %1656 = vrot.lane.b32.xlu1 %v1576_v58, %s3349_s27  ;;  %v537_v8 = vcombine.high %v3718_v4, %v3342_v9  ;;  %v3735_v58 = vrot.slane %v1941_v27, %v3609_v32 }
  0xb4   : > { %v1842_v40 = vcombine.high %v3709_v20, %v1826_v35 }
  0xb5   : > { %v1865_v44 = vrot.slane %v1857_v25, %v3414_v14  ;;  %v1849_v34 = vrot.slane %v1841_v37, %v3414_v14  ;;  %610 = vrot.lane.b32.xlu0 %v537_v8, %s3348_s26  ;;  %v506_v25 = vcombine.high %v481_v11, %v497_v38  ;;  %v558_v8 = vcombine.high %v3619_v13, %v3629_v24 }
  0xb6   : > { %v1973_v50 = vcombine.high %v3735_v58, %v3342_v9  ;;  %v3747_v22 = vpop.permute.xlu0 %861  ;;  %v556_v11 = vrot.slane %v542_v42, %v3414_v14  ;;  %v1926_v13 = vcombine.high %v3649_v45, %v3658_v59  ;;  %v606_v24 = vcombine.high %v3672_v39, %v3342_v9 }
  0xb7   : > { %v1873_v19 = vcombine.low %v1849_v34, %v1865_v44  ;;  %1664 = vrot.lane.b32.xlu1 %v1577_v21, %s3350_s28  ;;  %v1874_v31 = vcombine.high %v1849_v34, %v1865_v44  ;;  %v572_v38 = vrot.slane %v558_v8, %v3414_v14  ;;  %v474_v34 = vcombine.high %v3676_v49, %v3690_v41  ;;  %v3779_v21 = vpop.permute.xlu1 %865 }
  0xb8   : > { %v1940_v45 = vrot.slane %v1926_v13, %v3414_v14  ;;  %v1974_v59 = vcombine.high %v3683_v3, %v3342_v9  ;;  %v504_v39 = vrot.slane %v490_v26, %v3414_v14  ;;  %v1858_v49 = vcombine.high %v3707_v16, %v1830_v30 }
  0xb9   : > { %v3732_v1 = vrot.slane %v1873_v19, %v3609_v32  ;;  %v1888_v27 = vrot.slane %v1874_v31, %v3609_v32  ;;  %v589_v12 = vcombine.low %v556_v11, %v572_v38  ;;  %v488_v43 = vrot.slane %v474_v34, %v3414_v14 }
  0xba   : > { %v3766_v44 = vpop.permute.xlu0 %869  ;;  %v1957_v3 = vcombine.low %v1924_v46, %v1940_v45  ;;  %v1856_v8 = vrot.slane %v1842_v40, %v3414_v14  ;;  %v590_v26 = vcombine.high %v556_v11, %v572_v38 }
  0xbb   : > { %1672 = vrot.lane.b32.xlu1 %v1578_v2, %s3351_s29  ;;  %v1905_v37 = vcombine.high %v3732_v1, %v3342_v9  ;;  %v520_v2 = vrot.slane %v506_v25, %v3609_v32  ;;  %v597_v19 = vrot.slane %v589_v12, %v3609_v32  ;;  %v1872_v25 = vrot.slane %v1858_v49, %v3414_v14  ;;  %v3791_v30 = vpop.permute.xlu1 %873 }
  0xbc   : > { %v1906_v35 = vcombine.high %v1888_v27, %v3342_v9  ;;  %v521_v16 = vcombine.low %v488_v43, %v504_v39  ;;  %v1965_v20 = vrot.slane %v1957_v3, %v3609_v32  ;;  %v1958_v12 = vcombine.high %v1924_v46, %v1940_v45 }
  0xbd   : > { %1978 = vrot.lane.b32.xlu0 %v1905_v37, %s3348_s26  ;;  %v538_v41 = vcombine.high %v520_v2, %v3342_v9  ;;  %v607_v31 = vcombine.high %v597_v19, %v3342_v9  ;;  %v1890_v3 = vcombine.high %v1856_v8, %v1872_v25 }
  0xbe   : > { %v3783_v37 = vpop.permute.xlu0 %2447  ;;  %v529_v42 = vrot.slane %v521_v16, %v3609_v32  ;;  %v1972_v38 = vrot.slane %v1958_v12, %v3609_v32 }
  0xbf   : > { %2006 = vrot.lane.b32.xlu1 %v1973_v50, %s3348_s26  ;;  %v1889_v50 = vcombine.low %v1856_v8, %v1872_v25  ;;  %v3801_v15 = vpop.permute.xlu1 %2451  ;;  %v3837_v25 = vrot.slane %v327_v53, %v3609_v32 }
  0xc1   : > { %614 = vrot.lane.b32.xlu0 %v520_v2, %s3345_s23  ;;  %v1897_v13 = vrot.slane %v1889_v50, %v3609_v32  ;;  %v359_v53 = vcombine.high %v3837_v25, %v3342_v9 }
  0xc2   : > { %v3795_v2 = vpop.permute.xlu0 %2455 }
  0xc3   : > { %646 = vrot.lane.b32.xlu1 %v606_v24, %s3349_s27  ;;  %v1975_v24 = vcombine.high %v1965_v20, %v3342_v9  ;;  %v3811_v49 = vpop.permute.xlu1 %2459  ;;  %v1907_v40 = vcombine.high %v1897_v13, %v3342_v9 }
  0xc5   : > { %1982 = vrot.lane.b32.xlu0 %v1888_v27, %s3345_s23  ;;  %v539_v27 = vcombine.high %v529_v42, %v3342_v9 }
  0xc6   : > { %v3805_v34 = vpop.permute.xlu0 %859 }
  0xc7   : > { %2014 = vrot.lane.b32.xlu1 %v1974_v59, %s3349_s27  ;;  %v604_v59 = vrot.slane %v590_v26, %v3609_v32 }
  0xc9   : > { %618 = vrot.lane.b32.xlu0 %v538_v41, %s3349_s27  ;;  %v522_v41 = vcombine.high %v488_v43, %v504_v39  ;;  %v608_v45 = vcombine.high %v604_v59, %v3342_v9  ;;  %v1904_v39 = vrot.slane %v1890_v3, %v3609_v32  ;;  %v1976_v43 = vcombine.high %v1972_v38, %v3342_v9 }
  0xca   : > { %v4593_v3 = vcombine.low %v3450_v28, %v3437_v23 }
  0xcb   : > { %650 = vrot.lane.b32.xlu1 %v597_v19, %s3346_s24  ;;  %v3815_v19 = vpop.permute.xlu0 %867  ;;  %v536_v11 = vrot.slane %v522_v41, %v3609_v32  ;;  %v1908_v50 = vcombine.high %v1904_v39, %v3342_v9 }
  0xcc   : > { %v351_v60 = vrot.slane %v4593_v3, %v3609_v32 }
  0xcd   : > { %1986 = vrot.lane.b32.xlu0 %v1906_v35, %s3349_s27  ;;  %v3821_v35 = vpop.permute.xlu1 %863  ;;  %v540_v8 = vcombine.high %v536_v11, %v3342_v9 }
  0xcf   : > { %2018 = vrot.lane.b32.xlu1 %v1965_v20, %s3346_s24  ;;  %v3825_v46 = vpop.permute.xlu0 %2445  ;;  %v3845_v20 = vrot.slane %v2239_v56, %v3609_v32 }
  0xd1   : > { %622 = vrot.lane.b32.xlu0 %v529_v42, %s3346_s24  ;;  %v3831_v16 = vpop.permute.xlu1 %871  ;;  %v2271_v56 = vcombine.high %v3845_v20, %v3342_v9 }
  0xd3   : > { %654 = vrot.lane.b32.xlu1 %v607_v31, %s3350_s28  ;;  %v3847_v42 = vpop.permute.xlu0 %2453  ;;  %v3857_v31 = vrot.slane %v259_v57, %v3609_v32  ;;  %v3873_v57 = vrot.slane %v2171_v63, %v3609_v32  ;;  %v2254_v63 = vrot.slane %v2240_v0, %v3609_v32 }
  0xd5   : > { %1990 = vrot.lane.b32.xlu0 %v1897_v13, %s3346_s24  ;;  %v3862_v13 = vpop.permute.xlu1 %2449  ;;  %4590 = vst [vmem:[#allocation2_spill] sm:$0xff] %v3873_v57  ;;  %v2203_v12 = vcombine.high %v3873_v57, %v3342_v9  ;;  %v2272_v0 = vcombine.high %v2254_v63, %v3342_v9 }
  0xd7   : > { %2022 = vrot.lane.b32.xlu1 %v1975_v24, %s3350_s28  ;;  %v291_v24 = vcombine.high %v3857_v31, %v3342_v9  ;;  %v3867_v26 = vpop.permute.xlu0 %2777 }
  0xd9   : > { %626 = vrot.lane.b32.xlu0 %v539_v27, %s3350_s28  ;;  %v342_v27 = vrot.slane %v328_v62, %v3609_v32 }
  0xdb   : > { %658 = vrot.lane.b32.xlu1 %v604_v59, %s3347_s25  ;;  %v3881_v59 = vpop.permute.xlu1 %2457  ;;  %v360_v41 = vcombine.high %v342_v27, %v3342_v9 }
  0xdd   : > { %1994 = vrot.lane.b32.xlu0 %v1907_v40, %s3350_s28  ;;  %v3890_v40 = vpop.permute.xlu0 %2785 }
  0xdf   : > { %2026 = vrot.lane.b32.xlu1 %v1972_v38, %s3347_s25  ;;  %v3898_v62 = vpop.permute.xlu1 %2781 }
  0xe1   : > { %630 = vrot.lane.b32.xlu0 %v536_v11, %s3347_s25  ;;  %v3902_v38 = vpop.permute.xlu0 %2775 }
  0xe3   : > { %662 = vrot.lane.b32.xlu1 %v608_v45, %s3351_s29  ;;  %v3911_v52 = vpop.permute.xlu1 %2789 }
  0xe5   : > { %1998 = vrot.lane.b32.xlu0 %v1904_v39, %s3347_s25  ;;  %v3915_v11 = vpop.permute.xlu0 %2783  ;;  %v4594_v39 = vcombine.low %v3590_v5, %v3593_v7 }
  0xe7   : > { %2030 = vrot.lane.b32.xlu1 %v1976_v43, %s3351_s29  ;;  %v3923_v45 = vpop.permute.xlu1 %2779  ;;  %v2263_v43 = vrot.slane %v4594_v39, %v3609_v32 }
  0xe9   : > { %634 = vrot.lane.b32.xlu0 %v540_v8, %s3351_s29  ;;  %v2273_v47 = vcombine.high %v2263_v43, %v3342_v9 }
  0xeb   : > { %2002 = vrot.lane.b32.xlu1 %v1908_v50, %s3351_s29  ;;  %v4595_v50 = vcombine.low %v3468_v36, %v3459_v33 }
  0xed   : > { %392 = vrot.lane.b32.xlu0 %v359_v53, %s3348_s26  ;;  %v283_v53 = vrot.slane %v4595_v50, %v3609_v32  ;;  %v2537_v50 = vcombine.low %v3783_v37, %v3795_v2 }
  0xef   : > { %2304 = vrot.lane.b32.xlu1 %v2271_v56, %s3348_s26  ;;  %v361_v56 = vcombine.high %v351_v60, %v3342_v9 }
  0xf1   : > { %364 = vrot.lane.b32.xlu0 %v291_v24, %s3348_s26  ;;  %v3937_v24 = vpop.permute.xlu1 %2787 }
  0xf3   : > { %396 = vrot.lane.b32.xlu1 %v342_v27, %s3345_s23 }
  0xf5   : > { %2276 = vrot.lane.b32.xlu0 %v2203_v12, %s3348_s26  ;;  %v4596_v12 = vcombine.low %v3598_v17, %v3601_v18 }
  0xf7   : > { %2308 = vrot.lane.b32.xlu1 %v2254_v63, %s3345_s23  ;;  %v2195_v63 = vrot.slane %v4596_v12, %v3609_v32 }
  0xf9   : > { %368 = vrot.lane.b32.xlu0 %v274_v48, %s3345_s23  ;;  %v2205_v3 = vcombine.high %v2195_v63, %v3342_v9 }
  0xfb   : > { %400 = vrot.lane.b32.xlu1 %v360_v41, %s3349_s27  ;;  %v293_v41 = vcombine.high %v283_v53, %v3342_v9 }
  0xfd   : > { %2280 = vrot.lane.b32.xlu0 %v2186_v55, %s3345_s23  ;;  %v4597_v55 = vcombine.high %v3450_v28, %v3437_v23  ;;  %v4598_v23 = vcombine.high %v3590_v5, %v3593_v7  ;;  %v883_v7 = vcombine.low %v3805_v34, %v3815_v19 }
  0xff   : > { %2312 = vrot.lane.b32.xlu1 %v2272_v0, %s3349_s27  ;;  %v358_v0 = vrot.slane %v4597_v55, %v3609_v32  ;;  %v2270_v28 = vrot.slane %v4598_v23, %v3609_v32  ;;  %v899_v55 = vcombine.low %v3821_v35, %v3831_v16  ;;  %v4012_v23 = vrot.slane %v883_v7, %v3414_v14 }
 0x101   : > { %372 = vrot.lane.b32.xlu0 %v292_v51, %s3349_s27 }
 0x103   : > { %404 = vrot.lane.b32.xlu1 %v351_v60, %s3346_s24  ;;  %v951_v60 = vcombine.low %v3747_v22, %v3766_v44 }
 0x105   : > { %v1681_v8 = vpop.permute.xlu0 %1680  ;;  %2284 = vrot.lane.b32.xlu0 %v2204_v61, %s3349_s27  ;;  %v967_v61 = vcombine.low %v3779_v21, %v3791_v30 }
 0x107   : > { %2316 = vrot.lane.b32.xlu1 %v2263_v43, %s3346_s24  ;;  %v3985_v5 = vrot.slane %v967_v61, %v3414_v14 }
 0x109   : > { %v1689_v27 = vpop.permute.xlu0 %1688  ;;  %376 = vrot.lane.b32.xlu0 %v283_v53, %s3346_s24  ;;  %v2553_v53 = vcombine.low %v3801_v15, %v3811_v49 }
 0x10b   : > { %408 = vrot.lane.b32.xlu1 %v361_v56, %s3350_s28 }
 0x10d   : > { %v3946_v48 = vpop.permute.xlu1 %1652  ;;  %2288 = vrot.lane.b32.xlu0 %v2195_v63, %s3346_s24  ;;  %v1697_v54 = vpop.permute.xlu0 %1696  ;;  %v3982_v63 = vrot.slane %v951_v60, %v3414_v14  ;;  %v3999_v60 = vrot.slane %v2553_v53, %v3414_v14 }
 0x10f   : > { %2320 = vrot.lane.b32.xlu1 %v2273_v47, %s3350_s28 }
 0x111   : > { %v3955_v51 = vpop.permute.xlu1 %1660  ;;  %380 = vrot.lane.b32.xlu0 %v293_v41, %s3350_s28  ;;  %v1677_v39 = vpop.permute.xlu0 %1676 }
 0x112   : > { %v1710_v43 = vsel %vm419_vm0, %v3635_v29, %v1677_v39  ;;  %v4599_v29 = vcombine.high %v3468_v36, %v3459_v33  ;;  %v362_v33 = vcombine.high %v358_v0, %v3342_v9  ;;  %v3996_v36 = vrot.slane %v2537_v50, %v3414_v14 }
 0x113   : > { %412 = vrot.lane.b32.xlu1 %v358_v0, %s3347_s25  ;;  %v1711_v47 = vsel %vm421_vm1, %v1710_v43, %v1681_v8  ;;  %v4600_v8 = vcombine.high %v3598_v17, %v3601_v18  ;;  %v2274_v43 = vcombine.high %v2270_v28, %v3342_v9  ;;  %v983_v0 = vcombine.low %v3982_v63, %v3985_v5 }
 0x114   : > { %v290_v12 = vrot.slane %v4599_v29, %v3609_v32  ;;  %v4016_v29 = vrot.slane %v899_v55, %v3414_v14  ;;  %v2485_v17 = vcombine.low %v3862_v13, %v3881_v59 }
 0x115   : > { %v3974_v56 = vpop.permute.xlu1 %1668  ;;  %2292 = vrot.lane.b32.xlu0 %v2205_v3, %s3350_s28  ;;  %v1685_v41 = vpop.permute.xlu0 %1684  ;;  %v2202_v39 = vrot.slane %v4600_v8, %v3609_v32  ;;  %v4033_v8 = vrot.slane %v983_v0, %v3609_v32 }
 0x116   : > { %v1712_v3 = vsel %vm423_vm2, %v1711_v47, %v1685_v41  ;;  %v2469_v47 = vcombine.low %v3825_v46, %v3847_v42  ;;  %v294_v7 = vcombine.high %v290_v12, %v3342_v9 }
 0x117   : > { %2324 = vrot.lane.b32.xlu1 %v2270_v28, %s3347_s25  ;;  %v1713_v50 = vsel %vm425_vm3, %v1712_v3, %v1689_v27  ;;  %v2569_v28 = vcombine.low %v3996_v36, %v3999_v60  ;;  %v2206_v3 = vcombine.high %v2202_v39, %v3342_v9 }
 0x119   : > { %v4001_v61 = vpop.permute.xlu1 %642  ;;  %384 = vrot.lane.b32.xlu0 %v290_v12, %s3347_s25  ;;  %v1693_v53 = vpop.permute.xlu0 %1692 }
 0x11a   : > { %v1714_v18 = vsel %vm427_vm4, %v1713_v50, %v1693_v53  ;;  %v2477_v50 = vrot.slane %v2469_v47, %v3414_v14  ;;  %v2493_v53 = vrot.slane %v2485_v17, %v3414_v14  ;;  %v1015_v47 = vcombine.high %v4033_v8, %v3342_v9 }
 0x11b   : > { %416 = vrot.lane.b32.xlu1 %v362_v33, %s3351_s29  ;;  %v1715_v55 = vsel %vm429_vm5, %v1714_v18, %v1697_v54  ;;  %v915_v33 = vcombine.low %v4012_v23, %v4016_v29  ;;  %v4044_v54 = vrot.slane %v2569_v28, %v3609_v32 }
 0x11c   : > { %v2501_v0 = vcombine.low %v2477_v50, %v2493_v53 }
 0x11d   : > { %v4026_v27 = vpop.permute.xlu1 %2010  ;;  %2296 = vrot.lane.b32.xlu0 %v2202_v39, %s3347_s25  ;;  %v1701_v41 = vpop.permute.xlu0 %1700 }
 0x11e   : > { %v1716_v57 = vsel %vm431_vm6, %v1715_v55, %v1701_v41 }
 0x11f   : > { %2328 = vrot.lane.b32.xlu1 %v2274_v43, %s3351_s29  ;;  %3245 = vmatprep.subr.msk.mxu0 %vm685_vm7, %v1716_v57  ;;  %v4052_v43 = vrot.slane %v915_v33, %v3609_v32  ;;  %v984_v57 = vcombine.high %v3982_v63, %v3985_v5  ;;  %v4068_v63 = vrot.slane %v2501_v0, %v3609_v32 }
 0x121   : > { %v1649_v12 = vpop.permute.xlu1 %1648  ;;  %388 = vrot.lane.b32.xlu0 %v294_v7, %s3351_s29  ;;  %v4062_v7 = vpop.permute.xlu0 %638  ;;  %v947_v41 = vcombine.high %v4052_v43, %v3342_v9 }
 0x122   : > { %v1703_v39 = vsel %vm419_vm0, %v3686_v10, %v1649_v12  ;;  %v2601_v10 = vcombine.high %v4044_v54, %v3342_v9  ;;  %v916_v12 = vcombine.high %v4012_v23, %v4016_v29  ;;  %v3244_v29 = vld [vmem:[%s4585_s1 + $0x20] sm:$0xff] }
 0x123   : > { %2300 = vrot.lane.b32.xlu1 %v2206_v3, %s3351_s29  ;;  %v1704_v17 = vsel %vm421_vm1, %v1703_v39, %v3946_v48  ;;  %v2570_v48 = vcombine.high %v3996_v36, %v3999_v60  ;;  %v998_v3 = vrot.slane %v984_v57, %v3609_v32  ;;  %v2533_v36 = vcombine.high %v4068_v63, %v3342_v9 }
 0x124   : > { %v968_v60 = vcombine.high %v3779_v21, %v3791_v30 }
 0x125   : > { %v1657_v18 = vpop.permute.xlu1 %1656  ;;  %1048 = vrot.lane.b32.xlu0 %v1015_v47, %s3348_s26  ;;  %v2584_v47 = vrot.slane %v2570_v48, %v3609_v32 }
 0x126   : > { %v1705_v28 = vsel %vm423_vm2, %v1704_v17, %v1657_v18  ;;  %v2502_v17 = vcombine.high %v2477_v50, %v2493_v53  ;;  %v982_v30 = vrot.slane %v968_v60, %v3414_v14  ;;  %v2554_v50 = vcombine.high %v3801_v15, %v3811_v49 }
 0x127   : > { %2634 = vrot.lane.b32.xlu1 %v2601_v10, %s3348_s26  ;;  %v1706_v5 = vsel %vm425_vm3, %v1705_v28, %v3955_v51  ;;  %v4079_v39 = vpop.permute.xlu0 %610  ;;  %v952_v51 = vcombine.high %v3747_v22, %v3766_v44  ;;  %v930_v44 = vrot.slane %v916_v12, %v3609_v32  ;;  %v1016_v18 = vcombine.high %v998_v3, %v3342_v9 }
 0x128   : > { %v884_v10 = vcombine.high %v3805_v34, %v3815_v19  ;;  %v900_v28 = vcombine.high %v3821_v35, %v3831_v16  ;;  %v2602_v34 = vcombine.high %v2584_v47, %v3342_v9  ;;  %v2470_v16 = vcombine.high %v3825_v46, %v3847_v42 }
 0x129   : > { %v1665_v55 = vpop.permute.xlu1 %1664  ;;  %1020 = vrot.lane.b32.xlu0 %v947_v41, %s3348_s26  ;;  %v4102_v21 = vrot.slane %v952_v51, %v3414_v14  ;;  %v2568_v41 = vrot.slane %v2554_v50, %v3414_v14 }
 0x12a   : > { %v1707_v33 = vsel %vm427_vm4, %v1706_v5, %v1665_v55  ;;  %v898_v19 = vrot.slane %v884_v10, %v3414_v14  ;;  %v914_v35 = vrot.slane %v900_v28, %v3414_v14  ;;  %v2486_v5 = vcombine.high %v3862_v13, %v3881_v59  ;;  %v3320_v28 = vld [vmem:[%s3391_s20 + $0x9] ss:$48 sps:$4 sm:$0xff]  }
 0x12b   : > { %1052 = vrot.lane.b32.xlu1 %v998_v3, %s3345_s23  ;;  %v1708_v23 = vsel %vm429_vm5, %v1707_v33, %v3974_v56  ;;  %v2538_v56 = vcombine.high %v3783_v37, %v3795_v2  ;;  %v2516_v2 = vrot.slane %v2502_v17, %v3609_v32  ;;  %v999_v15 = vcombine.low %v4102_v21, %v982_v30 }
 0x12c   : > { %v948_v3 = vcombine.high %v930_v44, %v3342_v9  ;;  %v931_v51 = vcombine.low %v898_v19, %v914_v35  ;;  %v2484_v60 = vrot.slane %v2470_v16, %v3414_v14  ;;  %v2500_v46 = vrot.slane %v2486_v5, %v3414_v14 }
 0x12d   : > { %v1673_v0 = vpop.permute.xlu1 %1672  ;;  %2606 = vrot.lane.b32.xlu0 %v2533_v36, %s3348_s26  ;;  %v2552_v49 = vrot.slane %v2538_v56, %v3414_v14  ;;  %v1007_v36 = vrot.slane %v999_v15, %v3609_v32  ;;  %v2534_v13 = vcombine.high %v2516_v2, %v3342_v9  ;;  %v1000_v50 = vcombine.high %v4102_v21, %v982_v30 }
 0x12e   : > { %v1709_v57 = vsel %vm431_vm6, %v1708_v23, %v1673_v0  ;;  %v4178_v30 = vrot.slane %v3320_v28, %v3414_v14 }
 0x12f   : > { %2638 = vrot.lane.b32.xlu1 %v2584_v47, %s3345_s23  ;;  %3246 = vmatpush1.msk.msra.mxu0 %vm685_vm7, %v1709_v57  ;;  %v4098_v22 = vpop.permute.xlu0 %1978  ;;  %v2585_v33 = vcombine.low %v2552_v49, %v2568_v41  ;;  %v2517_v47 = vcombine.low %v2484_v60, %v2500_v46  ;;  %v1017_v17 = vcombine.high %v1007_v36, %v3342_v9 }
 0x130   : > { %3247 = vmatmul.mubr.msk.f32.vlgmr.msra.gmra.mrb[0].mxu0 %vm681_vm8, %v3244_v29  ;;  %v939_v29 = vrot.slane %v931_v51, %v3609_v32  ;;  %v2586_v16 = vcombine.high %v2552_v49, %v2568_v41  ;;  %v1014_v21 = vrot.slane %v1000_v50, %v3609_v32  ;;  %v2518_v49 = vcombine.high %v2484_v60, %v2500_v46  ;;  %v3324_v41 = vld [vmem:[%s3391_s20 + $0x1] ss:$48 sps:$4 sm:$0xff]  }
 0x131   : > { %v4110_v53 = vpop.permute.xlu1 %2006  ;;  %1024 = vrot.lane.b32.xlu0 %v930_v44, %s3345_s23  ;;  %2122 = vmatprep.mubr.f32.mxu0 %v3342_v9  ;;  %v2593_v0 = vrot.slane %v2585_v33, %v3609_v32  ;;  %v2525_v56 = vrot.slane %v2517_v47, %v3609_v32  ;;  %v932_v33 = vcombine.high %v898_v19, %v914_v35 }
 0x132   : > { %v2883_v47 = vcombine.low %v3898_v62, %v3911_v52  ;;  %v2600_v19 = vrot.slane %v2586_v16, %v3609_v32  ;;  %v672_v60 = vsel %vm419_vm0, %v3694_v6, %v4062_v7  ;;  %v2532_v50 = vrot.slane %v2518_v49, %v3609_v32 }
 0x133   : > { %1056 = vrot.lane.b32.xlu1 %v1016_v18, %s3349_s27  ;;  %v4120_v37 = vpop.permute.xlu0 %614  ;;  %v2603_v10 = vcombine.high %v2593_v0, %v3342_v9  ;;  %v2535_v51 = vcombine.high %v2525_v56, %v3342_v9  ;;  %v673_v7 = vsel %vm421_vm1, %v672_v60, %v4001_v61  ;;  %v2815_v49 = vcombine.low %v3923_v45, %v3937_v24 }
 0x134   : > { %v4214_v6 = vrot.slane %v2883_v47, %v3414_v14 }
 0x135   : > { %v4126_v48 = vpop.permute.xlu1 %646  ;;  %2610 = vrot.lane.b32.xlu0 %v2516_v2, %s3345_s23  ;;  %v3322_v2 = vld [vmem:[%s3391_s20 + $0x21] ss:$48 sps:$4 sm:$0xff]  }
 0x137   : > { %2642 = vrot.lane.b32.xlu1 %v2602_v34, %s3349_s27  ;;  %v4137_v55 = vpop.permute.xlu0 %1982  ;;  %v949_v34 = vcombine.high %v939_v29, %v3342_v9 }
 0x139   : > { %v4140_v12 = vpop.permute.xlu1 %2014  ;;  %1028 = vrot.lane.b32.xlu0 %v948_v3, %s3349_s27  ;;  %v4181_v3 = vrot.slane %v3322_v2, %v3414_v14 }
 0x13b   : > { %1060 = vrot.lane.b32.xlu1 %v1007_v36, %s3346_s24  ;;  %v4147_v42 = vpop.permute.xlu0 %618  ;;  %v1281_v35 = vcombine.low %v4178_v30, %v4181_v3 }
 0x13d   : > { %v651_v59 = vpop.permute.xlu1 %650  ;;  %2614 = vrot.lane.b32.xlu0 %v2534_v13, %s3349_s27  ;;  %v3326_v13 = vld [vmem:[%s3391_s20 + $0x19] ss:$48 sps:$4 sm:$0xff]   ;;  %v4220_v16 = vrot.slane %v1281_v35, %v3609_v32  ;;  %v2536_v35 = vcombine.high %v2532_v50, %v3342_v9 }
 0x13e   : > { %v4208_v28 = vrot.slane %v3326_v13, %v3414_v14  ;;  %v2604_v13 = vcombine.high %v2600_v19, %v3342_v9 }
 0x13f   : > { %2646 = vrot.lane.b32.xlu1 %v2593_v0, %s3346_s24  ;;  %v4153_v23 = vpop.permute.xlu0 %1986  ;;  %v2867_v0 = vcombine.low %v3867_v26, %v3890_v40 }
 0x141   : > { %v4156_v57 = vpop.permute.xlu1 %2018  ;;  %1032 = vrot.lane.b32.xlu0 %v939_v29, %s3346_s24  ;;  %v4211_v2 = vrot.slane %v2867_v0, %v3414_v14 }
 0x143   : > { %1064 = vrot.lane.b32.xlu1 %v1017_v17, %s3350_s28  ;;  %v4161_v44 = vpop.permute.xlu0 %622  ;;  %v946_v17 = vrot.slane %v932_v33, %v3609_v32  ;;  %v2040_v33 = vsel %vm419_vm0, %v3735_v58, %v4110_v53  ;;  %v2899_v53 = vcombine.low %v4211_v2, %v4214_v6 }
 0x145   : > { %v655_v18 = vpop.permute.xlu1 %654  ;;  %2618 = vrot.lane.b32.xlu0 %v2525_v56, %s3346_s24  ;;  %v1018_v56 = vcombine.high %v1014_v21, %v3342_v9  ;;  %v950_v47 = vcombine.high %v946_v17, %v3342_v9 }
 0x147   : > { %2650 = vrot.lane.b32.xlu1 %v2603_v10, %s3350_s28  ;;  %v4170_v15 = vpop.permute.xlu0 %1990  ;;  %v4205_v10 = vrot.slane %v3324_v41, %v3414_v14 }
 0x149   : > { %v4173_v5 = vpop.permute.xlu1 %2022  ;;  %1036 = vrot.lane.b32.xlu0 %v949_v34, %s3350_s28  ;;  %v1213_v58 = vcombine.low %v4205_v10, %v4208_v28 }
 0x14b   : > { %1068 = vrot.lane.b32.xlu1 %v1014_v21, %s3347_s25  ;;  %v4184_v36 = vpop.permute.xlu0 %626  ;;  %v2799_v21 = vcombine.low %v3902_v38, %v3915_v11 }
 0x14d   : > { %v659_v29 = vpop.permute.xlu1 %658  ;;  %2622 = vrot.lane.b32.xlu0 %v2535_v51, %s3350_s28  ;;  %v674_v51 = vsel %vm423_vm2, %v673_v7, %v4126_v48  ;;  %v2041_v48 = vsel %vm421_vm1, %v2040_v33, %v4026_v27 }
 0x14e   : > { %v675_v61 = vsel %vm425_vm3, %v674_v51, %v651_v59 }
 0x14f   : > { %2654 = vrot.lane.b32.xlu1 %v2600_v19, %s3347_s25  ;;  %v1995_v46 = vpop.permute.xlu0 %1994  ;;  %v676_v0 = vsel %vm427_vm4, %v675_v61, %v655_v18  ;;  %v1313_v18 = vcombine.high %v4220_v16, %v3342_v9  ;;  %v4248_v19 = vrot.slane %v2799_v21, %v3414_v14 }
 0x150   : > { %v677_v59 = vsel %vm429_vm5, %v676_v0, %v659_v29  ;;  %v4257_v29 = vrot.slane %v2815_v49, %v3414_v14 }
 0x151   : > { %v2027_v34 = vpop.permute.xlu1 %2026  ;;  %1040 = vrot.lane.b32.xlu0 %v946_v17, %s3347_s25  ;;  %v665_v17 = vsel %vm419_vm0, %v3718_v4, %v4079_v39  ;;  %v2033_v4 = vsel %vm419_vm0, %v3732_v1, %v4098_v22  ;;  %v4282_v1 = vrot.slane %v2899_v53, %v3609_v32 }
 0x153   : > { %1072 = vrot.lane.b32.xlu1 %v1018_v56, %s3351_s29  ;;  %v631_v41 = vpop.permute.xlu0 %630  ;;  %v2042_v56 = vsel %vm423_vm2, %v2041_v48, %v4140_v12  ;;  %v2900_v48 = vcombine.high %v4211_v2, %v4214_v6 }
 0x154   : > { %v2043_v7 = vsel %vm425_vm3, %v2042_v56, %v4156_v57  ;;  %v2034_v57 = vsel %vm421_vm1, %v2033_v4, %v4137_v55  ;;  %v1282_v55 = vcombine.high %v4178_v30, %v4181_v3  ;;  %v3328_v56 = vld [vmem:[%s3391_s20 + $0xd] ss:$48 sps:$4 sm:$0xff]  }
 0x155   : > { %v663_v60 = vpop.permute.xlu1 %662  ;;  %2626 = vrot.lane.b32.xlu0 %v2532_v50, %s3347_s25  ;;  %v666_v50 = vsel %vm421_vm1, %v665_v17, %v4120_v37  ;;  %v2044_v12 = vsel %vm427_vm4, %v2043_v7, %v4173_v5  ;;  %v4273_v37 = vrot.slane %v1213_v58, %v3609_v32  ;;  %v2035_v22 = vsel %vm423_vm2, %v2034_v57, %v4153_v23 }
 0x156   : > { %v678_v27 = vsel %vm431_vm6, %v677_v59, %v663_v60  ;;  %v667_v39 = vsel %vm423_vm2, %v666_v50, %v4147_v42  ;;  %v2045_v51 = vsel %vm429_vm5, %v2044_v12, %v2027_v34  ;;  %v2036_v34 = vsel %vm425_vm3, %v2035_v22, %v4170_v15 }
 0x157   : > { %2658 = vrot.lane.b32.xlu1 %v2604_v13, %s3351_s29  ;;  %3230 = vmatprep.subr.msk.mxu1 %vm685_vm7, %v678_v27  ;;  %v1999_v21 = vpop.permute.xlu0 %1998  ;;  %v668_v33 = vsel %vm425_vm3, %v667_v39, %v4161_v44  ;;  %v2831_v44 = vcombine.low %v4248_v19, %v4257_v29  ;;  %v2037_v13 = vsel %vm427_vm4, %v2036_v34, %v1995_v46  ;;  %v3329_v27 = vld [vmem:[%s3391_s20 + $0x25] ss:$48 sps:$4 sm:$0xff]  }
 0x158   : > { %v669_v42 = vsel %vm427_vm4, %v668_v33, %v4184_v36  ;;  %v3229_v36 = vld [vmem:[%s4585_s1 + $0x8] sm:$0xff]  ;;  %v2038_v3 = vsel %vm429_vm5, %v2037_v13, %v1999_v21  ;;  %v2931_v15 = vcombine.high %v4282_v1, %v3342_v9  ;;  %v1296_v58 = vrot.slane %v1282_v55, %v3609_v32 }
 0x159   : > { %v2031_v49 = vpop.permute.xlu1 %2030  ;;  %1044 = vrot.lane.b32.xlu0 %v950_v47, %s3351_s29  ;;  %v670_v61 = vsel %vm429_vm5, %v669_v42, %v631_v41  ;;  %v1245_v41 = vcombine.high %v4273_v37, %v3342_v9  ;;  %v3248_v47 = vld [vmem:[%s4585_s1 + $0x28] sm:$0xff]  ;;  %v4321_v53 = vrot.slane %v2831_v44, %v3609_v32  ;;  %v1214_v60 = vcombine.high %v4205_v10, %v4208_v28 }
 0x15a   : > { %v2046_v5 = vsel %vm431_vm6, %v2045_v51, %v2031_v49  ;;  %v2914_v6 = vrot.slane %v2900_v48, %v3609_v32  ;;  %v2832_v28 = vcombine.high %v4248_v19, %v4257_v29  ;;  %v1314_v7 = vcombine.high %v1296_v58, %v3342_v9  ;;  %v3330_v19 = vld [vmem:[%s3391_s20 + $0x5] ss:$48 sps:$4 sm:$0xff]   ;;  %v3331_v29 = vld [vmem:[%s3391_s20 + $0x1d] ss:$48 sps:$4 sm:$0xff]  }
 0x15b   : > { %2630 = vrot.lane.b32.xlu1 %v2536_v35, %s3351_s29  ;;  %3249 = vmatprep.subr.msk.mxu0 %vm685_vm7, %v2046_v5  ;;  %v635_v23 = vpop.permute.xlu0 %634  ;;  %v2863_v17 = vcombine.high %v4321_v53, %v3342_v9  ;;  %v1228_v10 = vrot.slane %v1214_v60, %v3609_v32  ;;  %v1264_v21 = vrot.slane %v3328_v56, %v3414_v14 }
 0x15c   : > { %v671_v30 = vsel %vm431_vm6, %v670_v61, %v635_v23  ;;  %v1280_v4 = vrot.slane %v3329_v27, %v3414_v14  ;;  %v2868_v39 = vcombine.high %v3867_v26, %v3890_v40  ;;  %v2884_v12 = vcombine.high %v3898_v62, %v3911_v52 }
 0x15d   : > { %v2003_v0 = vpop.permute.xlu1 %2002  ;;  %3231 = vmatpush1.msk.msra.mxu1 %vm685_vm7, %v671_v30  ;;  %1346 = vrot.lane.b32.xlu0 %v1313_v18, %s3348_s26  ;;  %v2846_v51 = vrot.slane %v2832_v28, %v3609_v32  ;;  %v2932_v62 = vcombine.high %v2914_v6, %v3342_v9  ;;  %v1246_v52 = vcombine.high %v1228_v10, %v3342_v9 }
 0x15e   : > { %v2039_v46 = vsel %vm431_vm6, %v2038_v3, %v2003_v0  ;;  %3232 = vmatmul.mubr.msk.f32.vlgmr.msra.gmra.mrb[0].mxu1 %vm681_vm8, %v3229_v36  ;;  %v1297_v49 = vcombine.low %v1264_v21, %v1280_v4  ;;  %v2882_v22 = vrot.slane %v2868_v39, %v3414_v14  ;;  %v2898_v26 = vrot.slane %v2884_v12, %v3414_v14 }
 0x15f   : > { %2964 = vrot.lane.b32.xlu1 %v2931_v15, %s3348_s26  ;;  %3250 = vmatpush1.msk.msra.mxu0 %vm685_vm7, %v2039_v46  ;;  %v4317_v35 = vpop.permute.xlu0 %392  ;;  %v1196_v42 = vrot.slane %v3330_v19, %v3414_v14  ;;  %v1212_v5 = vrot.slane %v3331_v29, %v3414_v14  ;;  %v2800_v55 = vcombine.high %v3902_v38, %v3915_v11 }
 0x160   : > { %3251 = vmatmul.mubr.msk.f32.vlgmr.msra.gmra.mrb[0].mxu0 %vm681_vm8, %v3248_v47  ;;  %836 = vmatprep.mubr.f32.mxu1 %v3342_v9  ;;  %v2816_v44 = vcombine.high %v3923_v45, %v3937_v24  ;;  %v1305_v61 = vrot.slane %v1297_v49, %v3609_v32  ;;  %v2915_v23 = vcombine.low %v2882_v22, %v2898_v26 }
 0x161   : > { %v4327_v59 = vpop.permute.xlu1 %2304  ;;  %1318 = vrot.lane.b32.xlu0 %v1245_v41, %s3348_s26  ;;  %2420 = vmatprep.mubr.f32.mxu0 %v3342_v9  ;;  %v1229_v13 = vcombine.low %v1196_v42, %v1212_v5  ;;  %v2814_v30 = vrot.slane %v2800_v55, %v3414_v14  ;;  %v2864_v11 = vcombine.high %v2846_v51, %v3342_v9 }
 0x162   : > { %v2830_v3 = vrot.slane %v2816_v44, %v3414_v14  ;;  %v2923_v24 = vrot.slane %v2915_v23, %v3609_v32  ;;  %v1315_v14 = vcombine.high %v1305_v61, %v3342_v9  ;;  %v1298_v48 = vcombine.high %v1264_v21, %v1280_v4 }
 0x163   : > { %1350 = vrot.lane.b32.xlu1 %v1296_v58, %s3345_s23  ;;  %v4334_v18 = vpop.permute.xlu0 %364  ;;  %v1237_v0 = vrot.slane %v1229_v13, %v3609_v32  ;;  %v2338_v44 = vsel %vm419_vm0, %v3845_v20, %v4327_v59 }
 0x164   : > { %v2847_v15 = vcombine.low %v2814_v30, %v2830_v3  ;;  %v2848_v29 = vcombine.high %v2814_v30, %v2830_v3  ;;  %v4601_v3 = vld [vmem:[#allocation2_spill] sm:$0xff] }
 0x165   : > { %v4340_v2 = vpop.permute.xlu1 %396  ;;  %2936 = vrot.lane.b32.xlu0 %v2863_v17, %s3348_s26  ;;  %v2933_v17 = vcombine.high %v2923_v24, %v3342_v9  ;;  %v1247_v56 = vcombine.high %v1237_v0, %v3342_v9 }
 0x166   : > { %v2855_v58 = vrot.slane %v2847_v15, %v3609_v32  ;;  %v2862_v55 = vrot.slane %v2848_v29, %v3609_v32 }
 0x167   : > { %2968 = vrot.lane.b32.xlu1 %v2914_v6, %s3345_s23  ;;  %v4348_v50 = vpop.permute.xlu0 %2276  ;;  %v1312_v6 = vrot.slane %v1298_v48, %v3609_v32 }
 0x168   : > { %v2865_v4 = vcombine.high %v2855_v58, %v3342_v9 }
 0x169   : > { %v4357_v57 = vpop.permute.xlu1 %2308  ;;  %1322 = vrot.lane.b32.xlu0 %v1228_v10, %s3345_s23  ;;  %v2916_v10 = vcombine.high %v2882_v22, %v2898_v26  ;;  %v1316_v49 = vcombine.high %v1312_v6, %v3342_v9  ;;  %v433_v22 = vsel %vm419_vm0, %v3837_v25, %v4317_v35 }
 0x16a   : > { %v434_v26 = vsel %vm421_vm1, %v433_v22, %v4340_v2  ;;  %v2339_v35 = vsel %vm421_vm1, %v2338_v44, %v4357_v57 }
 0x16b   : > { %1354 = vrot.lane.b32.xlu1 %v1314_v7, %s3349_s27  ;;  %v4363_v33 = vpop.permute.xlu0 %368  ;;  %v1230_v7 = vcombine.high %v1196_v42, %v1212_v5  ;;  %v2930_v12 = vrot.slane %v2916_v10, %v3609_v32 }
 0x16d   : > { %v401_v40 = vpop.permute.xlu1 %400  ;;  %2940 = vrot.lane.b32.xlu0 %v2846_v51, %s3345_s23  ;;  %v1244_v19 = vrot.slane %v1230_v7, %v3609_v32  ;;  %v420_v32 = vsel %vm419_vm0, %v3857_v31, %v4334_v18 }
 0x16e   : > { %v422_v57 = vsel %vm421_vm1, %v420_v32, %v4363_v33 }
 0x16f   : > { %2972 = vrot.lane.b32.xlu1 %v2932_v62, %s3349_s27  ;;  %v4378_v34 = vpop.permute.xlu0 %2280  ;;  %v1248_v23 = vcombine.high %v1244_v19, %v3342_v9 }
 0x171   : > { %v4381_v36 = vpop.permute.xlu1 %2312  ;;  %1326 = vrot.lane.b32.xlu0 %v1246_v52, %s3349_s27  ;;  %v435_v52 = vsel %vm423_vm2, %v434_v26, %v401_v40  ;;  %v2934_v40 = vcombine.high %v2930_v12, %v3342_v9 }
 0x172   : > { %v2340_v20 = vsel %vm423_vm2, %v2339_v35, %v4381_v36 }
 0x173   : > { %1358 = vrot.lane.b32.xlu1 %v1305_v61, %s3346_s24  ;;  %v4387_v38 = vpop.permute.xlu0 %372 }
 0x174   : > { %v424_v31 = vsel %vm423_vm2, %v422_v57, %v4387_v38 }
 0x175   : > { %v405_v45 = vpop.permute.xlu1 %404  ;;  %2944 = vrot.lane.b32.xlu0 %v2864_v11, %s3349_s27  ;;  %v2331_v11 = vsel %vm419_vm0, %v4601_v3, %v4348_v50 }
 0x176   : > { %v436_v42 = vsel %vm425_vm3, %v435_v52, %v405_v45  ;;  %v2332_v36 = vsel %vm421_vm1, %v2331_v11, %v4378_v34 }
 0x177   : > { %2976 = vrot.lane.b32.xlu1 %v2923_v24, %s3346_s24  ;;  %v4394_v41 = vpop.permute.xlu0 %2284 }
 0x178   : > { %v2333_v50 = vsel %vm423_vm2, %v2332_v36, %v4394_v41 }
 0x179   : > { %v2317_v47 = vpop.permute.xlu1 %2316  ;;  %1330 = vrot.lane.b32.xlu0 %v1237_v0, %s3346_s24  ;;  %v2866_v0 = vcombine.high %v2862_v55, %v3342_v9 }
 0x17a   : > { %v2341_v13 = vsel %vm425_vm3, %v2340_v20, %v2317_v47 }
 0x17b   : > { %1362 = vrot.lane.b32.xlu1 %v1315_v14, %s3350_s28  ;;  %v377_v46 = vpop.permute.xlu0 %376 }
 0x17c   : > { %v426_v33 = vsel %vm425_vm3, %v424_v31, %v377_v46  ;;  %v440_v46 = vld [vmem:[%s4585_s1] sm:$0xff] }
 0x17d   : > { %v409_v60 = vpop.permute.xlu1 %408  ;;  %2948 = vrot.lane.b32.xlu0 %v2855_v58, %s3346_s24  ;;  %s3266_s24 = sshll.u32 %s4603_s16, 4 }
 0x17e   : > { %v437_v25 = vsel %vm427_vm4, %v436_v42, %v409_v60  ;;  %s210_s27 = scalar_lea.vmem %s4586_s2, %s3266_s24 }
 0x17f   : > { %2980 = vrot.lane.b32.xlu1 %v2933_v17, %s3350_s28  ;;  %v2289_v27 = vpop.permute.xlu0 %2288  ;;  %v3252_v17 = vld [vmem:[%s4585_s1 + $0x30] sm:$0xff] }
 0x180   : > { %v2334_v14 = vsel %vm425_vm3, %v2333_v50, %v2289_v27 }
 0x181   : > { %v2321_v28 = vpop.permute.xlu1 %2320  ;;  %1334 = vrot.lane.b32.xlu0 %v1247_v56, %s3350_s28 }
 0x182   : > { %v2342_v18 = vsel %vm427_vm4, %v2341_v13, %v2321_v28 }
 0x183   : > { %1366 = vrot.lane.b32.xlu1 %v1312_v6, %s3347_s25  ;;  %v381_v21 = vpop.permute.xlu0 %380 }
 0x184   : > { %v428_v15 = vsel %vm427_vm4, %v426_v33, %v381_v21 }
 0x185   : > { %v413_v39 = vpop.permute.xlu1 %412  ;;  %2952 = vrot.lane.b32.xlu0 %v2865_v4, %s3350_s28  ;;  %s3227_s28 = sshll.u32 %s4603_s16, 3 }
 0x186   : > { %v438_v2 = vsel %vm429_vm5, %v437_v25, %v413_v39  ;;  %s214_s5 = scalar_lea.vmem %s4587_s3, %s3227_s28  ;;  %s218_s8 = scalar_lea.vmem %s4588_s4, %s3227_s28 }
 0x187   : > { %2984 = vrot.lane.b32.xlu1 %v2930_v12, %s3347_s25  ;;  %v2293_v51 = vpop.permute.xlu0 %2292 }
 0x188   : > { %v2335_v58 = vsel %vm427_vm4, %v2334_v14, %v2293_v51 }
 0x189   : > { %v2325_v62 = vpop.permute.xlu1 %2324  ;;  %1338 = vrot.lane.b32.xlu0 %v1244_v19, %s3347_s25 }
 0x18a   : > { %v2343_v45 = vsel %vm429_vm5, %v2342_v18, %v2325_v62 }
 0x18b   : > { %1370 = vrot.lane.b32.xlu1 %v1316_v49, %s3351_s29  ;;  %v385_v5 = vpop.permute.xlu0 %384 }
 0x18c   : > { %v430_v34 = vsel %vm429_vm5, %v428_v15, %v385_v5 }
 0x18d   : > { %v417_v61 = vpop.permute.xlu1 %416  ;;  %2956 = vrot.lane.b32.xlu0 %v2862_v55, %s3347_s25 }
 0x18e   : > { %v439_v59 = vsel %vm431_vm6, %v438_v2, %v417_v61 }
 0x18f   : > { %2988 = vrot.lane.b32.xlu1 %v2934_v40, %s3351_s29  ;;  %3233 = vmatprep.subr.msk.mxu1 %vm685_vm7, %v439_v59  ;;  %v2297_v30 = vpop.permute.xlu0 %2296 }
 0x190   : > { %v2336_v48 = vsel %vm429_vm5, %v2335_v58, %v2297_v30 }
 0x191   : > { %v2329_v24 = vpop.permute.xlu1 %2328  ;;  %1342 = vrot.lane.b32.xlu0 %v1248_v23, %s3351_s29 }
 0x192   : > { %v2344_v38 = vsel %vm431_vm6, %v2343_v45, %v2329_v24 }
 0x193   : > { %2960 = vrot.lane.b32.xlu1 %v2866_v0, %s3351_s29  ;;  %3253 = vmatprep.subr.msk.mxu0 %vm685_vm7, %v2344_v38  ;;  %v389_v47 = vpop.permute.xlu0 %388 }
 0x194   : > { %v432_v41 = vsel %vm431_vm6, %v430_v34, %v389_v47  ;;  %v3236_v47 = vld [vmem:[%s4585_s1 + $0x10] sm:$0xff] }
 0x195   : > { %v2301_v60 = vpop.permute.xlu1 %2300  ;;  %3234 = vmatpush1.msk.msra.mxu1 %vm685_vm7, %v432_v41 }
 0x196   : > { %v2337_v56 = vsel %vm431_vm6, %v2336_v48, %v2301_v60  ;;  %3235 = vmatmul.mubr.msk.f32.vlgmr.msra.gmra.mrb[0].mxu1 %vm681_vm8, %v440_v46  ;;  %v3256_v60 = vld [vmem:[%s4585_s1 + $0x38] sm:$0xff] }
 0x197   : > { %3254 = vmatpush1.msk.msra.mxu0 %vm685_vm7, %v2337_v56  ;;  %v1049_v27 = vpop.permute.xlu0 %1048  ;;  %1164 = vmatprep.mubr.f32.mxu1 %v3342_v9 }
 0x198   : > { %3255 = vmatmul.mubr.msk.f32.vlgmr.msra.gmra.mrb[0].mxu0 %vm681_vm8, %v3252_v17  ;;  %v1082_v25 = vsel %vm419_vm0, %v4033_v8, %v1049_v27 }
 0x199   : > { %v2635_v6 = vpop.permute.xlu1 %2634  ;;  %2750 = vmatprep.mubr.f32.mxu0 %v3342_v9 }
 0x19a   : > { %v2668_v32 = vsel %vm419_vm0, %v4044_v54, %v2635_v6 }
 0x19b   : > { %v1021_v10 = vpop.permute.xlu0 %1020 }
 0x19c   : > { %v1075_v8 = vsel %vm419_vm0, %v4052_v43, %v1021_v10 }
 0x19d   : > { %v1053_v28 = vpop.permute.xlu1 %1052 }
 0x19e   : > { %v1083_v35 = vsel %vm421_vm1, %v1082_v25, %v1053_v28 }
 0x19f   : > { %v2607_v7 = vpop.permute.xlu0 %2606 }
 0x1a0   : > { %v2661_v18 = vsel %vm419_vm0, %v4068_v63, %v2607_v7 }
 0x1a1   : > { %v2639_v21 = vpop.permute.xlu1 %2638 }
 0x1a2   : > { %v2669_v59 = vsel %vm421_vm1, %v2668_v32, %v2639_v21 }
 0x1a3   : > { %v1025_v4 = vpop.permute.xlu0 %1024 }
 0x1a4   : > { %v1076_v11 = vsel %vm421_vm1, %v1075_v8, %v1025_v4 }
 0x1a5   : > { %v1057_v39 = vpop.permute.xlu1 %1056 }
 0x1a6   : > { %v1084_v61 = vsel %vm423_vm2, %v1083_v35, %v1057_v39 }
 0x1a7   : > { %v2611_v12 = vpop.permute.xlu0 %2610 }
 0x1a8   : > { %v2662_v43 = vsel %vm421_vm1, %v2661_v18, %v2611_v12 }
 0x1a9   : > { %v2643_v19 = vpop.permute.xlu1 %2642 }
 0x1aa   : > { %v2670_v30 = vsel %vm423_vm2, %v2669_v59, %v2643_v19 }
 0x1ab   : > { %v1029_v29 = vpop.permute.xlu0 %1028 }
 0x1ac   : > { %v1077_v36 = vsel %vm423_vm2, %v1076_v11, %v1029_v29 }
 0x1ad   : > { %v1061_v51 = vpop.permute.xlu1 %1060 }
 0x1ae   : > { %v1085_v40 = vsel %vm425_vm3, %v1084_v61, %v1061_v51 }
 0x1af   : > { %v2615_v49 = vpop.permute.xlu0 %2614 }
 0x1b0   : > { %v2663_v50 = vsel %vm423_vm2, %v2662_v43, %v2615_v49 }
 0x1b1   : > { %v2647_v22 = vpop.permute.xlu1 %2646 }
 0x1b2   : > { %v2671_v31 = vsel %vm425_vm3, %v2670_v30, %v2647_v22 }
 0x1b3   : > { %v1033_v26 = vpop.permute.xlu0 %1032 }
 0x1b4   : > { %v1078_v45 = vsel %vm425_vm3, %v1077_v36, %v1033_v26 }
 0x1b5   : > { %v1065_v62 = vpop.permute.xlu1 %1064 }
 0x1b6   : > { %v1086_v20 = vsel %vm427_vm4, %v1085_v40, %v1065_v62 }
 0x1b7   : > { %v2619_v52 = vpop.permute.xlu0 %2618 }
 0x1b8   : > { %v2664_v14 = vsel %vm425_vm3, %v2663_v50, %v2619_v52  ;;  %v3240_v50 = vld [vmem:[%s4585_s1 + $0x18] sm:$0xff] }
 0x1b9   : > { %v2651_v42 = vpop.permute.xlu1 %2650 }
 0x1ba   : > { %v2672_v33 = vsel %vm427_vm4, %v2671_v31, %v2651_v42 }
 0x1bb   : > { %v1037_v5 = vpop.permute.xlu0 %1036 }
 0x1bc   : > { %v1079_v15 = vsel %vm427_vm4, %v1078_v45, %v1037_v5 }
 0x1bd   : > { %v1069_v55 = vpop.permute.xlu1 %1068 }
 0x1be   : > { %v1087_v57 = vsel %vm429_vm5, %v1086_v20, %v1069_v55 }
 0x1bf   : > { %v2623_v44 = vpop.permute.xlu0 %2622 }
 0x1c0   : > { %v2665_v46 = vsel %vm427_vm4, %v2664_v14, %v2623_v44 }
 0x1c1   : > { %v2655_v2 = vpop.permute.xlu1 %2654 }
 0x1c2   : > { %v2673_v24 = vsel %vm429_vm5, %v2672_v33, %v2655_v2 }
 0x1c3   : > { %v1041_v23 = vpop.permute.xlu0 %1040 }
 0x1c4   : > { %v1080_v63 = vsel %vm429_vm5, %v1079_v15, %v1041_v23 }
 0x1c5   : > { %v1073_v13 = vpop.permute.xlu1 %1072 }
 0x1c6   : > { %v1088_v3 = vsel %vm431_vm6, %v1087_v57, %v1073_v13 }
 0x1c7   : > { %3237 = vmatprep.subr.msk.mxu1 %vm685_vm7, %v1088_v3  ;;  %v2627_v54 = vpop.permute.xlu0 %2626 }
 0x1c8   : > { %v2666_v41 = vsel %vm429_vm5, %v2665_v46, %v2627_v54 }
 0x1c9   : > { %v2659_v0 = vpop.permute.xlu1 %2658 }
 0x1ca   : > { %v2674_v38 = vsel %vm431_vm6, %v2673_v24, %v2659_v0 }
 0x1cb   : > { %3257 = vmatprep.subr.msk.mxu0 %vm685_vm7, %v2674_v38  ;;  %v1045_v34 = vpop.permute.xlu0 %1044 }
 0x1cc   : > { %v1081_v58 = vsel %vm431_vm6, %v1080_v63, %v1045_v34  ;;  %v3260_v34 = vld [vmem:[%s4585_s1 + $0x40] sm:$0xff] }
 0x1cd   : > { %v2631_v48 = vpop.permute.xlu1 %2630  ;;  %3238 = vmatpush1.msk.msra.mxu1 %vm685_vm7, %v1081_v58 }
 0x1ce   : > { %v2667_v17 = vsel %vm431_vm6, %v2666_v41, %v2631_v48  ;;  %3239 = vmatmul.mubr.msk.f32.vlgmr.msra.gmra.mrb[0].mxu1 %vm681_vm8, %v3236_v47 }
 0x1cf   : > { %3258 = vmatpush1.msk.msra.mxu0 %vm685_vm7, %v2667_v17  ;;  %v1347_v56 = vpop.permute.xlu0 %1346  ;;  %1462 = vmatprep.mubr.f32.mxu1 %v3342_v9 }
 0x1d0   : > { %3259 = vmatmul.mubr.msk.f32.vlgmr.msra.gmra.mrb[0].mxu0 %vm681_vm8, %v3256_v60 }
 0x1d1   : > { %v2965_v27 = vpop.permute.xlu1 %2964  ;;  %3080 = vmatprep.mubr.f32.mxu0 %v3342_v9  ;;  %v1380_v9 = vsel %vm419_vm0, %v4220_v16, %v1347_v56 }
 0x1d2   : > { %v2998_v40 = vsel %vm419_vm0, %v4282_v1, %v2965_v27 }
 0x1d3   : > { %v1319_v6 = vpop.permute.xlu0 %1318 }
 0x1d4   : > { %v1373_v16 = vsel %vm419_vm0, %v4273_v37, %v1319_v6 }
 0x1d5   : > { %v1351_v10 = vpop.permute.xlu1 %1350 }
 0x1d6   : > { %v1381_v44 = vsel %vm421_vm1, %v1380_v9, %v1351_v10 }
 0x1d7   : > { %v2937_v28 = vpop.permute.xlu0 %2936 }
 0x1d8   : > { %v2991_v3 = vsel %vm419_vm0, %v4321_v53, %v2937_v28 }
 0x1d9   : > { %v2969_v7 = vpop.permute.xlu1 %2968 }
 0x1da   : > { %v2999_v32 = vsel %vm421_vm1, %v2998_v40, %v2969_v7 }
 0x1db   : > { %v1323_v21 = vpop.permute.xlu0 %1322 }
 0x1dc   : > { %v1374_v8 = vsel %vm421_vm1, %v1373_v16, %v1323_v21 }
 0x1dd   : > { %v1355_v4 = vpop.permute.xlu1 %1354 }
 0x1de   : > { %v1382_v35 = vsel %vm423_vm2, %v1381_v44, %v1355_v4 }
 0x1df   : > { %v2941_v39 = vpop.permute.xlu0 %2940 }
 0x1e0   : > { %v2992_v37 = vsel %vm421_vm1, %v2991_v3, %v2941_v39 }
 0x1e1   : > { %v2973_v12 = vpop.permute.xlu1 %2972 }
 0x1e2   : > { %v3000_v57 = vsel %vm423_vm2, %v2999_v32, %v2973_v12 }
 0x1e3   : > { %v1327_v19 = vpop.permute.xlu0 %1326 }
 0x1e4   : > { %v1375_v11 = vsel %vm423_vm2, %v1374_v8, %v1327_v19 }
 0x1e5   : > { %v1359_v29 = vpop.permute.xlu1 %1358 }
 0x1e6   : > { %v1383_v2 = vsel %vm425_vm3, %v1382_v35, %v1359_v29 }
 0x1e7   : > { %v2945_v51 = vpop.permute.xlu0 %2944 }
 0x1e8   : > { %v2993_v33 = vsel %vm423_vm2, %v2992_v37, %v2945_v51 }
 0x1e9   : > { %v2977_v49 = vpop.permute.xlu1 %2976 }
 0x1ea   : > { %v3001_v30 = vsel %vm425_vm3, %v3000_v57, %v2977_v49 }
 0x1eb   : > { %v1331_v22 = vpop.permute.xlu0 %1330 }
 0x1ec   : > { %v1376_v54 = vsel %vm425_vm3, %v1375_v11, %v1331_v22 }
 0x1ed   : > { %v1363_v26 = vpop.permute.xlu1 %1362 }
 0x1ee   : > { %v1384_v23 = vsel %vm427_vm4, %v1383_v2, %v1363_v26 }
 0x1ef   : > { %v2949_v62 = vpop.permute.xlu0 %2948 }
 0x1f0   : > { %v2994_v53 = vsel %vm425_vm3, %v2993_v33, %v2949_v62 }
 0x1f1   : > { %v2981_v52 = vpop.permute.xlu1 %2980 }
 0x1f2   : > { %v3002_v31 = vsel %vm427_vm4, %v3001_v30, %v2981_v52 }
 0x1f3   : > { %v1335_v42 = vpop.permute.xlu0 %1334 }
 0x1f4   : > { %v1377_v43 = vsel %vm427_vm4, %v1376_v54, %v1335_v42 }
 0x1f5   : > { %v1367_v5 = vpop.permute.xlu1 %1366 }
 0x1f6   : > { %v1385_v20 = vsel %vm429_vm5, %v1384_v23, %v1367_v5 }
 0x1f7   : > { %v2953_v55 = vpop.permute.xlu0 %2952 }
 0x1f8   : > { %v2995_v15 = vsel %vm427_vm4, %v2994_v53, %v2953_v55 }
 0x1f9   : > { %v2985_v25 = vpop.permute.xlu1 %2984 }
 0x1fa   : > { %v3003_v18 = vsel %vm429_vm5, %v3002_v31, %v2985_v25 }
 0x1fb   : > { %v1339_v61 = vpop.permute.xlu0 %1338 }
 0x1fc   : > { %v1378_v24 = vsel %vm429_vm5, %v1377_v43, %v1339_v61 }
 0x1fd   : > { %v1371_v59 = vpop.permute.xlu1 %1370 }
 0x1fe   : > { %v1386_v13 = vsel %vm431_vm6, %v1385_v20, %v1371_v59 }
 0x1ff   : > { %3241 = vmatprep.subr.msk.mxu1 %vm685_vm7, %v1386_v13  ;;  %v2957_v1 = vpop.permute.xlu0 %2956 }
 0x200   : > { %v2996_v14 = vsel %vm429_vm5, %v2995_v15, %v2957_v1 }
 0x201   : > { %v2989_v36 = vpop.permute.xlu1 %2988 }
 0x202   : > { %v3004_v45 = vsel %vm431_vm6, %v3003_v18, %v2989_v36 }
 0x203   : > { %3261 = vmatprep.subr.msk.mxu0 %vm685_vm7, %v3004_v45  ;;  %v1343_v0 = vpop.permute.xlu0 %1342 }
 0x204   : > { %v1379_v38 = vsel %vm431_vm6, %v1378_v24, %v1343_v0 }
 0x205   : > { %v2961_v63 = vpop.permute.xlu1 %2960  ;;  %3242 = vmatpush1.msk.msra.mxu1 %vm685_vm7, %v1379_v38 }
 0x206   : > { %v2997_v47 = vsel %vm431_vm6, %v2996_v14, %v2961_v63  ;;  %3243 = vmatmul.mubr.msk.f32.vlgmr.msra.gmra.mrb[0].mxu1 %vm681_vm8, %v3240_v50 }
 0x207   : > { %3262 = vmatpush1.msk.msra.mxu0 %vm685_vm7, %v2997_v47 }
 0x208   : > { %3263 = vmatmul.mubr.msk.f32.vlgmr.msra.gmra.mrb[0].mxu0 %vm681_vm8, %v3260_v34 }
 0x2d9   : > { %v1464_v46 = vpop.f32.mrb[0].mxu1 }
 0x2da   : > { %v1466_v58 = vpop.f32.mrb[1].mxu1 }
 0x2db   : > { %v3082_v41 = vpop.f32.mrb[0].mxu0 }
 0x2dc   : > { %v3267_v48 = vadd.f32 %v3082_v41, %v1464_v46  ;;  %v3084_v60 = vpop.f32.mrb[1].mxu0 }
 0x2dd   : > { %v3268_v17 = vadd.f32 %v3084_v60, %v1466_v58 }
 0x2de   : > { %3089 = vst [vmem:[%s210_s27] sm:$0xff] %v3267_v48  ;;  %v3096_v56 = vmul.f32 %v3267_v48, %v3267_v48 }
 0x2df   : > { %3090 = vst [vmem:[%s210_s27 + $0x8] sm:$0xff] %v3268_v17  ;;  %v3097_v27 = vmul.f32 %v3268_v17, %v3268_v17  ;;  %v3091_v6 = vadd.f32 %v3268_v17, %v3267_v48 }
 0x2e1   : > { %3092 = vadd.xlane.f32.xlu0 %v3091_v6  ;;  %v3098_v10 = vadd.f32 %v3097_v27, %v3096_v56 }
 0x2e3   : > { %3099 = vadd.xlane.f32.xlu1 %v3098_v10 }
 0x36e   : > { %v3093_v28 = vpop.xlane.xlu0 %3092 }
 0x36f   : > { %3095 = vst.msk [vmem:[%s214_s5] sm:$0xff] %vm3094_vm9, %v3093_v28 }
 0x370   : > { %v3100_v7 = vpop.xlane.xlu1 %3099 }
 0x371   : > { %3101 = vst.msk [vmem:[%s218_s8] sm:$0xff] %vm3094_vm9, %v3100_v7 }
 0x372 PF: > { %s15_s15 = sadd.s32 1, %s3338_s15  }
 0x373   : > { %p12_p4 = scmp.ge.s32.totalorder %s15_s15, 4  }
 0x375   :  { %14 = sbr.rel (!%p12_p4) target bundleno = 1 (0x1), region = 90 }

</bundles_post_ra>
